<compile_context>
chip_gen: v5e
topology: v5e:2x2
jax: 0.10.0
libtpu: 0.0.40
codegen_flags: <defaults>
</compile_context>

<pallas_src>
import functools
import math

import jax
import jax.numpy as jnp
from jax.experimental import pallas as pl
from jax.experimental.pallas import tpu as pltpu

# Conservative scoped-VMEM cap that is valid on v5e / v6e / v7x.
VMEM_LIMIT = 32 * 1024 * 1024


def _pick_tile(dim, target, aligns):
    """Largest tile <= target that divides `dim` and is a multiple of one of
    `aligns` (tried in order, e.g. 256 first for the v6e/v7x MXU, then 128);
    falls back to the full dimension (always legal for BlockSpec)."""
    if dim <= target:
        return dim
    for align in aligns:
        t = (target // align) * align
        while t >= align:
            if dim % t == 0:
                return t
            t -= align
    return dim


# ----------------------------------------------------------------------------
# Dense (bias + optional GELU), tiled with K-axis accumulator
# ----------------------------------------------------------------------------
def _dense_kernel(x_ref, w_ref, b_ref, o_ref, acc_ref, *, activation):
    k = pl.program_id(2)

    @pl.when(k == 0)
    def _():
        acc_ref[...] = jnp.zeros_like(acc_ref)

    acc_ref[...] += jnp.dot(x_ref[...].astype(jnp.bfloat16), w_ref[...],
                            preferred_element_type=jnp.float32)

    @pl.when(k == pl.num_programs(2) - 1)
    def _():
        y = acc_ref[...] + b_ref[...]
        if activation == "gelu":
            # TODO(synk): HF BERT uses exact (erf) GELU; tanh approximation used here.
            y = jax.nn.gelu(y, approximate=True)
        o_ref[...] = y.astype(o_ref.dtype)


def dense(x, w, b, activation=None):
    M, K = x.shape
    N = w.shape[1]
    tm = _pick_tile(M, 256, (8,))
    tn = _pick_tile(N, 512, (256, 128))
    tk = _pick_tile(K, 512, (256, 128))
    return pl.pallas_call(
        functools.partial(_dense_kernel, activation=activation),
        out_shape=jax.ShapeDtypeStruct((M, N), jnp.float32),
        grid=(M // tm, N // tn, K // tk),
        in_specs=[
            pl.BlockSpec((tm, tk), lambda i, j, k: (i, k)),
            pl.BlockSpec((tk, tn), lambda i, j, k: (k, j)),
            pl.BlockSpec((1, tn), lambda i, j, k: (0, j)),
        ],
        out_specs=pl.BlockSpec((tm, tn), lambda i, j, k: (i, j)),
        scratch_shapes=[pltpu.VMEM((tm, tn), jnp.float32)],
        compiler_params=pltpu.CompilerParams(
            dimension_semantics=("parallel", "parallel", "arbitrary"),
            vmem_limit_bytes=VMEM_LIMIT),
    )(x, w, b.reshape(1, N))


# ----------------------------------------------------------------------------
# Dense with fused residual-add + LayerNorm epilogue (full hidden dim per block)
# ----------------------------------------------------------------------------
def _dense_add_ln_kernel(x_ref, w_ref, b_ref, r_ref, g_ref, bt_ref,
                         o_ref, acc_ref, *, eps):
    k = pl.program_id(1)

    @pl.when(k == 0)
    def _():
        acc_ref[...] = jnp.zeros_like(acc_ref)

    acc_ref[...] += jnp.dot(x_ref[...].astype(jnp.bfloat16), w_ref[...],
                            preferred_element_type=jnp.float32)

    @pl.when(k == pl.num_programs(1) - 1)
    def _():
        h = acc_ref[...] + b_ref[...] + r_ref[...]
        mu = jnp.mean(h, axis=-1, keepdims=True)
        var = jnp.mean(jnp.square(h - mu), axis=-1, keepdims=True)
        o_ref[...] = ((h - mu) * jax.lax.rsqrt(var + eps) * g_ref[...]
                      + bt_ref[...]).astype(o_ref.dtype)


def dense_add_layernorm(x, w, b, residual, gamma, beta, eps=1e-12):
    M, K = x.shape
    N = w.shape[1]                      # full hidden dim kept per block (LN axis)
    tm = _pick_tile(M, 256, (8,))
    tk = _pick_tile(K, 512, (256, 128))
    return pl.pallas_call(
        functools.partial(_dense_add_ln_kernel, eps=eps),
        out_shape=jax.ShapeDtypeStruct((M, N), jnp.float32),
        grid=(M // tm, K // tk),
        in_specs=[
            pl.BlockSpec((tm, tk), lambda i, k: (i, k)),
            pl.BlockSpec((tk, N), lambda i, k: (k, 0)),
            pl.BlockSpec((1, N), lambda i, k: (0, 0)),
            pl.BlockSpec((tm, N), lambda i, k: (i, 0)),
            pl.BlockSpec((1, N), lambda i, k: (0, 0)),
            pl.BlockSpec((1, N), lambda i, k: (0, 0)),
        ],
        out_specs=pl.BlockSpec((tm, N), lambda i, k: (i, 0)),
        scratch_shapes=[pltpu.VMEM((tm, N), jnp.float32)],
        compiler_params=pltpu.CompilerParams(
            dimension_semantics=("parallel", "arbitrary"),
            vmem_limit_bytes=VMEM_LIMIT),
    )(x, w, b.reshape(1, N), residual, gamma.reshape(1, N), beta.reshape(1, N))


# ----------------------------------------------------------------------------
# Plain LayerNorm (embeddings) — no zero-residual DMA, tiled over rows
# ----------------------------------------------------------------------------
def _ln_kernel(x_ref, g_ref, b_ref, o_ref, *, eps):
    h = x_ref[...]
    mu = jnp.mean(h, axis=-1, keepdims=True)
    var = jnp.mean(jnp.square(h - mu), axis=-1, keepdims=True)
    o_ref[...] = (h - mu) * jax.lax.rsqrt(var + eps) * g_ref[...] + b_ref[...]


def layernorm(x, gamma, beta, eps=1e-12):
    M, H = x.shape
    tm = _pick_tile(M, 512, (8,))
    return pl.pallas_call(
        functools.partial(_ln_kernel, eps=eps),
        out_shape=jax.ShapeDtypeStruct((M, H), jnp.float32),
        grid=(M // tm,),
        in_specs=[
            pl.BlockSpec((tm, H), lambda i: (i, 0)),
            pl.BlockSpec((1, H), lambda i: (0, 0)),
            pl.BlockSpec((1, H), lambda i: (0, 0)),
        ],
        out_specs=pl.BlockSpec((tm, H), lambda i: (i, 0)),
        compiler_params=pltpu.CompilerParams(
            dimension_semantics=("parallel",),
            vmem_limit_bytes=VMEM_LIMIT),
    )(x, gamma.reshape(1, H), beta.reshape(1, H))


# ----------------------------------------------------------------------------
# Flash-style multi-head attention on (B, S, H) layout, in-kernel iota mask
# ----------------------------------------------------------------------------
def _flash_attn_kernel(q_ref, k_ref, v_ref, o_ref, m_sc, l_sc, acc_sc, *,
                       num_heads, head_dim, scale, causal, q_blk, kv_blk):
    kv_i = pl.program_id(2)

    @pl.when(kv_i == 0)
    def _():
        m_sc[...] = jnp.full(m_sc.shape, -jnp.inf, m_sc.dtype)
        l_sc[...] = jnp.zeros_like(l_sc)
        acc_sc[...] = jnp.zeros_like(acc_sc)

    q_all = q_ref[0].astype(jnp.bfloat16)   # (q_blk, H)
    k_all = k_ref[0].astype(jnp.bfloat16)   # (kv_blk, H)
    v_all = v_ref[0].astype(jnp.bfloat16)   # (kv_blk, H)

    if causal:
        q_start = pl.program_id(1) * q_blk
        k_start = kv_i * kv_blk
        row = jax.lax.broadcasted_iota(jnp.int32, (q_blk, kv_blk), 0) + q_start
        col = jax.lax.broadcasted_iota(jnp.int32, (q_blk, kv_blk), 1) + k_start
        bias = jnp.where(row >= col, 0.0, -1e9).astype(jnp.float32)

    for h in range(num_heads):
        lo, hi = h * head_dim, (h + 1) * head_dim
        qh = q_all[:, lo:hi]
        kh = k_all[:, lo:hi]
        vh = v_all[:, lo:hi]
        s = jax.lax.dot_general(qh, kh, (((1,), (1,)), ((), ())),
                                preferred_element_type=jnp.float32) * scale
        if causal:
            s = s + bias
        m_prev = m_sc[h]
        m_new = jnp.maximum(m_prev, jnp.max(s, axis=-1, keepdims=True))
        alpha = jnp.exp(m_prev - m_new)
        p = jnp.exp(s - m_new)
        l_sc[h] = alpha * l_sc[h] + jnp.sum(p, axis=-1, keepdims=True)
        acc_sc[h] = alpha * acc_sc[h] + jnp.dot(p.astype(jnp.bfloat16), vh,
                                                preferred_element_type=jnp.float32)
        m_sc[h] = m_new

    @pl.when(kv_i == pl.num_programs(2) - 1)
    def _():
        outs = [acc_sc[h] * pl.reciprocal(l_sc[h], approx=True)
                for h in range(num_heads)]
        # Single lane-dense (q_blk, H) store instead of per-head narrow stores.
        o_ref[0] = jnp.concatenate(outs, axis=-1).astype(o_ref.dtype)


def flash_attention(q, k, v, *, num_heads, causal):
    B, S, H = q.shape
    Dh = H // num_heads
    scale = 1.0 / math.sqrt(Dh)
    tq = _pick_tile(S, 256, (8,))
    tkv = _pick_tile(S, 512, (8,))
    return pl.pallas_call(
        functools.partial(_flash_attn_kernel, num_heads=num_heads, head_dim=Dh,
                          scale=scale, causal=causal, q_blk=tq, kv_blk=tkv),
        out_shape=jax.ShapeDtypeStruct((B, S, H), jnp.float32),
        grid=(B, S // tq, S // tkv),
        in_specs=[
            pl.BlockSpec((1, tq, H), lambda b, qi, ki: (b, qi, 0)),
            pl.BlockSpec((1, tkv, H), lambda b, qi, ki: (b, ki, 0)),
            pl.BlockSpec((1, tkv, H), lambda b, qi, ki: (b, ki, 0)),
        ],
        out_specs=pl.BlockSpec((1, tq, H), lambda b, qi, ki: (b, qi, 0)),
        scratch_shapes=[
            pltpu.VMEM((num_heads, tq, 1), jnp.float32),
            pltpu.VMEM((num_heads, tq, 1), jnp.float32),
            pltpu.VMEM((num_heads, tq, Dh), jnp.float32),
        ],
        compiler_params=pltpu.CompilerParams(
            dimension_semantics=("parallel", "parallel", "arbitrary"),
            vmem_limit_bytes=VMEM_LIMIT),
    )(q, k, v)


# ----------------------------------------------------------------------------
# Classifier fused with softmax (inference path)
# ----------------------------------------------------------------------------
def _cls_softmax_kernel(x_ref, w_ref, b_ref, o_ref, acc_ref):
    k = pl.program_id(1)

    @pl.when(k == 0)
    def _():
        acc_ref[...] = jnp.zeros_like(acc_ref)

    acc_ref[...] += jnp.dot(x_ref[...].astype(jnp.bfloat16), w_ref[...],
                            preferred_element_type=jnp.float32)

    @pl.when(k == pl.num_programs(1) - 1)
    def _():
        logits = acc_ref[...] + b_ref[...]
        logits = logits - jnp.max(logits, axis=-1, keepdims=True)
        e = jnp.exp(logits)
        o_ref[...] = e * pl.reciprocal(jnp.sum(e, axis=-1, keepdims=True),
                                       approx=True)


def classifier_softmax(x, w, b):
    # TODO(synk): for realistic vocab sizes (~30K) the vocab axis should also be
    # tiled (with an output rescale pass); full-V blocks are fine at this scale.
    M, K = x.shape
    V = w.shape[1]
    tm = _pick_tile(M, 256, (8,))
    tk = _pick_tile(K, 512, (256, 128))
    return pl.pallas_call(
        _cls_softmax_kernel,
        out_shape=jax.ShapeDtypeStruct((M, V), jnp.float32),
        grid=(M // tm, K // tk),
        in_specs=[
            pl.BlockSpec((tm, tk), lambda i, k: (i, k)),
            pl.BlockSpec((tk, V), lambda i, k: (k, 0)),
            pl.BlockSpec((1, V), lambda i, k: (0, 0)),
        ],
        out_specs=pl.BlockSpec((tm, V), lambda i, k: (i, 0)),
        scratch_shapes=[pltpu.VMEM((tm, V), jnp.float32)],
        compiler_params=pltpu.CompilerParams(
            dimension_semantics=("parallel", "arbitrary"),
            vmem_limit_bytes=VMEM_LIMIT),
    )(x, w, b.reshape(1, V))


# ----------------------------------------------------------------------------
# Classifier fused with cross-entropy (training path): online log-sum-exp over
# vocab tiles, label logit picked by select — logits never hit HBM.
# ----------------------------------------------------------------------------
def _cls_ce_kernel(x_ref, w_ref, b_ref, y_ref, nll_ref, m_sc, l_sc, corr_sc, *, tv):
    vi = pl.program_id(1)

    @pl.when(vi == 0)
    def _():
        m_sc[...] = jnp.full(m_sc.shape, -jnp.inf, m_sc.dtype)
        l_sc[...] = jnp.zeros_like(l_sc)
        corr_sc[...] = jnp.zeros_like(corr_sc)

    logits = jnp.dot(x_ref[...].astype(jnp.bfloat16), w_ref[...],
                     preferred_element_type=jnp.float32) + b_ref[...]
    col = jax.lax.broadcasted_iota(jnp.int32, logits.shape, 1) + vi * tv
    labels = y_ref[...]                                   # (tm, 1) int32
    corr_sc[...] += jnp.sum(jnp.where(col == labels, logits, 0.0),
                            axis=-1, keepdims=True)
    m_prev = m_sc[...]
    m_new = jnp.maximum(m_prev, jnp.max(logits, axis=-1, keepdims=True))
    l_sc[...] = (jnp.exp(m_prev - m_new) * l_sc[...]
                 + jnp.sum(jnp.exp(logits - m_new), axis=-1, keepdims=True))
    m_sc[...] = m_new

    @pl.when(vi == pl.num_programs(1) - 1)
    def _():
        nll_ref[...] = (m_sc[...] + jnp.log(l_sc[...])) - corr_sc[...]


def classifier_cross_entropy(x, w, b, labels):
    M, H = x.shape
    V = w.shape[1]
    tm = _pick_tile(M, 256, (8,))
    tv = _pick_tile(V, 2048, (256, 128))
    return pl.pallas_call(
        functools.partial(_cls_ce_kernel, tv=tv),
        out_shape=jax.ShapeDtypeStruct((M, 1), jnp.float32),
        grid=(M // tm, V // tv),
        in_specs=[
            pl.BlockSpec((tm, H), lambda i, v: (i, 0)),
            pl.BlockSpec((H, tv), lambda i, v: (0, v)),
            pl.BlockSpec((1, tv), lambda i, v: (0, v)),
            pl.BlockSpec((tm, 1), lambda i, v: (i, 0)),
        ],
        out_specs=pl.BlockSpec((tm, 1), lambda i, v: (i, 0)),
        scratch_shapes=[pltpu.VMEM((tm, 1), jnp.float32)] * 3,
        compiler_params=pltpu.CompilerParams(
            dimension_semantics=("parallel", "arbitrary"),
            vmem_limit_bytes=VMEM_LIMIT),
    )(x, w, b.reshape(1, V), labels.reshape(M, 1).astype(jnp.int32))


# ----------------------------------------------------------------------------
# Synthetic BERT parameters (deterministic init; matmul weights in bf16)
# ----------------------------------------------------------------------------
def init_params(key, *, vocab_size, hidden, num_layers, intermediate,
                max_pos=64, type_vocab=2):
    std = 0.02
    keys = jax.random.split(key, 4 + 8 * num_layers)
    wdt = jnp.bfloat16
    p = {
        "word_emb": jax.random.normal(keys[0], (vocab_size, hidden), jnp.float32) * std,
        "pos_emb": jax.random.normal(keys[1], (max_pos, hidden), jnp.float32) * std,
        "type_emb": jax.random.normal(keys[2], (type_vocab, hidden), jnp.float32) * std,
        "emb_ln_g": jnp.ones((hidden,), jnp.float32),
        "emb_ln_b": jnp.zeros((hidden,), jnp.float32),
        "layers": [],
    }
    ki = 3
    for _ in range(num_layers):
        wq = jax.random.normal(keys[ki + 0], (hidden, hidden), jnp.float32) * std
        wk = jax.random.normal(keys[ki + 1], (hidden, hidden), jnp.float32) * std
        wv = jax.random.normal(keys[ki + 2], (hidden, hidden), jnp.float32) * std
        lp = {
            "w_qkv": jnp.concatenate([wq, wk, wv], axis=1).astype(wdt),
            "b_qkv": jnp.zeros((3 * hidden,), jnp.float32),
            "wo": (jax.random.normal(keys[ki + 3], (hidden, hidden), jnp.float32) * std).astype(wdt),
            "bo": jnp.zeros((hidden,), jnp.float32),
            "ln1_g": jnp.ones((hidden,), jnp.float32),
            "ln1_b": jnp.zeros((hidden,), jnp.float32),
            "wi": (jax.random.normal(keys[ki + 4], (hidden, intermediate), jnp.float32) * std).astype(wdt),
            "bi": jnp.zeros((intermediate,), jnp.float32),
            "wf": (jax.random.normal(keys[ki + 5], (intermediate, hidden), jnp.float32) * std).astype(wdt),
            "bf": jnp.zeros((hidden,), jnp.float32),
            "ln2_g": jnp.ones((hidden,), jnp.float32),
            "ln2_b": jnp.zeros((hidden,), jnp.float32),
        }
        ki += 8
        p["layers"].append(lp)
    p["cls_w"] = (jax.random.normal(keys[-1], (hidden, vocab_size), jnp.float32) * std).astype(wdt)
    p["cls_b"] = jnp.zeros((vocab_size,), jnp.float32)
    return p


# ----------------------------------------------------------------------------
# LanguageModel.forward equivalent
# ----------------------------------------------------------------------------
def language_model_forward(params, x, y=None, *, num_heads):
    B, S = x.shape
    H = params["word_emb"].shape[1]

    # Embedding gather / sums are plain-JAX glue; LayerNorm runs in a kernel.
    emb = (params["word_emb"][x]
           + params["pos_emb"][:S][None, :, :]
           + params["type_emb"][0][None, None, :])
    h = layernorm(emb.reshape(B * S, H).astype(jnp.float32),
                  params["emb_ln_g"], params["emb_ln_b"])

    # Causal (tril) mask when training, full attention at inference; the mask
    # is generated from iota *inside* the attention kernel (never materialized).
    causal = y is not None

    for lp in params["layers"]:
        qkv = dense(h, lp["w_qkv"], lp["b_qkv"])            # fused Q|K|V projection
        q = qkv[:, :H].reshape(B, S, H)
        k = qkv[:, H:2 * H].reshape(B, S, H)
        v = qkv[:, 2 * H:].reshape(B, S, H)
        ctx = flash_attention(q, k, v, num_heads=num_heads, causal=causal)
        h = dense_add_layernorm(ctx.reshape(B * S, H), lp["wo"], lp["bo"],
                                h, lp["ln1_g"], lp["ln1_b"])
        inter = dense(h, lp["wi"], lp["bi"], activation="gelu")
        h = dense_add_layernorm(inter, lp["wf"], lp["bf"],
                                h, lp["ln2_g"], lp["ln2_b"])

    if y is not None:
        nll = classifier_cross_entropy(h, params["cls_w"], params["cls_b"],
                                       y.reshape(-1))
        return jnp.mean(nll)          # tiny scalar reduction left to XLA
    probs = classifier_softmax(h, params["cls_w"], params["cls_b"])
    return probs.reshape(B, S, -1)


# ----------------------------------------------------------------------------
if __name__ == "__main__":
    config = {
        "hidden_size": 32,
        "vocab_size": 64,
        "num_layers": 2,
        "num_heads": 2,
        "intermediate_size": 64,
    }
    B, S = 2, 8

    key = jax.random.PRNGKey(0)
    pkey, xkey, ykey = jax.random.split(key, 3)
    params = init_params(
        pkey,
        vocab_size=config["vocab_size"],
        hidden=config["hidden_size"],
        num_layers=config["num_layers"],
        intermediate=config["intermediate_size"],
    )

    x = jax.random.randint(xkey, (B, S), 0, config["vocab_size"], dtype=jnp.int32)
    y = jax.random.randint(ykey, (B, S), 0, config["vocab_size"], dtype=jnp.int32)

    fwd = jax.jit(functools.partial(language_model_forward,
                                    num_heads=config["num_heads"]))

    # Training path: scalar cross-entropy loss with causal mask.
    loss = fwd(params, x, y)
    # Inference path: softmax probabilities over vocab.
    probs = fwd(params, x, None)

    jax.block_until_ready((loss, probs))
    assert probs.shape == (B, S, config["vocab_size"])
    print("KERNEL_OK")
</pallas_src>

<mosaic_0001>
module attributes {stable_mosaic.version = 11 : i64} {
  func.func @_dense_kernel(%arg0: i32, %arg1: i32, %arg2: i32, %arg3: memref<16x32xf32, #tpu.memory_space<vmem>>, %arg4: memref<32x96xbf16, #tpu.memory_space<vmem>>, %arg5: memref<1x96xf32, #tpu.memory_space<vmem>>, %arg6: memref<16x96xf32, #tpu.memory_space<vmem>>, %arg7: memref<16x96xf32, #tpu.memory_space<vmem>>) attributes {dimension_semantics = [#tpu.dimension_semantics<parallel>, #tpu.dimension_semantics<parallel>, #tpu.dimension_semantics<arbitrary>], iteration_bounds = array<i64: 1, 1, 1>, scalar_prefetch = 0 : i64, scratch_operands = 1 : i64, tpu.core_type = #tpu.core_type<tc>, window_params = [{transform_indices = @transform_0, window_bounds = array<i64: 16, 32>}, {transform_indices = @transform_1, window_bounds = array<i64: 32, 96>}, {transform_indices = @transform_2, window_bounds = array<i64: 1, 96>}, {transform_indices = @transform_3, window_bounds = array<i64: 16, 96>}]} {
    %c0_i32 = arith.constant 0 : i32
    %0 = arith.cmpi eq, %arg2, %c0_i32 : i32
    %1 = arith.extui %0 : i1 to i32
    %c0_i32_0 = arith.constant 0 : i32
    %2 = arith.cmpi ne, %1, %c0_i32_0 : i32
    scf.if %2 {
      %cst_10 = arith.constant 0.000000e+00 : f32
      %13 = vector.broadcast %cst_10 : f32 to vector<16x96xf32>
      %c0_11 = arith.constant 0 : index
      %c0_12 = arith.constant 0 : index
      %14 = vector.load %arg7[%c0_11, %c0_12] : memref<16x96xf32, #tpu.memory_space<vmem>>, vector<16x96xf32>
      tpu.vector_store %arg7[%c0_11, %c0_12], %13 {strides = array<i32>} : memref<16x96xf32, #tpu.memory_space<vmem>>, vector<16x96xf32>,
    } else {
    }
    %c0 = arith.constant 0 : index
    %c0_1 = arith.constant 0 : index
    %3 = vector.load %arg7[%c0, %c0_1] : memref<16x96xf32, #tpu.memory_space<vmem>>, vector<16x96xf32>
    %c0_2 = arith.constant 0 : index
    %c0_3 = arith.constant 0 : index
    %4 = vector.load %arg3[%c0_2, %c0_3] : memref<16x32xf32, #tpu.memory_space<vmem>>, vector<16x32xf32>
    %5 = arith.truncf %4 : vector<16x32xf32> to vector<16x32xbf16>
    %c0_4 = arith.constant 0 : index
    %c0_5 = arith.constant 0 : index
    %6 = vector.load %arg4[%c0_4, %c0_5] : memref<32x96xbf16, #tpu.memory_space<vmem>>, vector<32x96xbf16>
    %cst = arith.constant dense<0.000000e+00> : vector<16x96xf32>
    %7 = tpu.matmul %5, %6, %cst {dimension_numbers = #tpu.dot_dimension_numbers<[1], [0], [0], [1], [0, 0, 1, 1], [], []>} : vector<16x32xbf16>, vector<32x96xbf16>, vector<16x96xf32> -> vector<16x96xf32>
    %8 = arith.addf %3, %7 : vector<16x96xf32>
    %c0_6 = arith.constant 0 : index
    %c0_7 = arith.constant 0 : index
    %9 = vector.load %arg7[%c0_6, %c0_7] : memref<16x96xf32, #tpu.memory_space<vmem>>, vector<16x96xf32>
    tpu.vector_store %arg7[%c0_6, %c0_7], %8 {strides = array<i32>} : memref<16x96xf32, #tpu.memory_space<vmem>>, vector<16x96xf32>,
    %c0_i32_8 = arith.constant 0 : i32
    %10 = arith.cmpi eq, %arg2, %c0_i32_8 : i32
    %11 = arith.extui %10 : i1 to i32
    %c0_i32_9 = arith.constant 0 : i32
    %12 = arith.cmpi ne, %11, %c0_i32_9 : i32
    scf.if %12 {
      %c0_10 = arith.constant 0 : index
      %c0_11 = arith.constant 0 : index
      %13 = vector.load %arg7[%c0_10, %c0_11] : memref<16x96xf32, #tpu.memory_space<vmem>>, vector<16x96xf32>
      %c0_12 = arith.constant 0 : index
      %c0_13 = arith.constant 0 : index
      %14 = vector.load %arg5[%c0_12, %c0_13] : memref<1x96xf32, #tpu.memory_space<vmem>>, vector<1x96xf32>
      %15 = vector.broadcast %14 : vector<1x96xf32> to vector<16x96xf32>
      %16 = arith.addf %13, %15 : vector<16x96xf32>
      %c0_14 = arith.constant 0 : index
      %c0_15 = arith.constant 0 : index
      %17 = vector.load %arg6[%c0_14, %c0_15] : memref<16x96xf32, #tpu.memory_space<vmem>>, vector<16x96xf32>
      tpu.vector_store %arg6[%c0_14, %c0_15], %16 {strides = array<i32>} : memref<16x96xf32, #tpu.memory_space<vmem>>, vector<16x96xf32>,
    } else {
    }
    return
  }
  func.func @transform_0(%arg0: i32, %arg1: i32, %arg2: i32) -> (i32, i32) {
    %c0_i32 = arith.constant 0 : i32
    return %arg0, %arg2 : i32, i32
  }
  func.func @transform_1(%arg0: i32, %arg1: i32, %arg2: i32) -> (i32, i32) {
    %c0_i32 = arith.constant 0 : i32
    return %arg2, %arg1 : i32, i32
  }
  func.func @transform_2(%arg0: i32, %arg1: i32, %arg2: i32) -> (i32, i32) {
    %c0_i32 = arith.constant 0 : i32
    %c0_i32_0 = arith.constant 0 : i32
    return %c0_i32, %arg1 : i32, i32
  }
  func.func @transform_3(%arg0: i32, %arg1: i32, %arg2: i32) -> (i32, i32) {
    %c0_i32 = arith.constant 0 : i32
    return %arg0, %arg1 : i32, i32
  }
}

module attributes {stable_mosaic.version = 11 : i64} {
  func.func @_ln_kernel(%arg0: i32, %arg1: memref<16x32xf32, #tpu.memory_space<vmem>>, %arg2: memref<1x32xf32, #tpu.memory_space<vmem>>, %arg3: memref<1x32xf32, #tpu.memory_space<vmem>>, %arg4: memref<16x32xf32, #tpu.memory_space<vmem>>) attributes {dimension_semantics = [#tpu.dimension_semantics<parallel>], iteration_bounds = array<i64: 1>, scalar_prefetch = 0 : i64, scratch_operands = 0 : i64, tpu.core_type = #tpu.core_type<tc>, window_params = [{transform_indices = @transform_0, window_bounds = array<i64: 16, 32>}, {pipeline_mode = #tpu.pipeline_mode<synchronous>, transform_indices = @transform_1, window_bounds = array<i64: 1, 32>}, {pipeline_mode = #tpu.pipeline_mode<synchronous>, transform_indices = @transform_2, window_bounds = array<i64: 1, 32>}, {transform_indices = @transform_3, window_bounds = array<i64: 16, 32>}]} {
    %c0 = arith.constant 0 : index
    %c0_0 = arith.constant 0 : index
    %0 = vector.load %arg1[%c0, %c0_0] : memref<16x32xf32, #tpu.memory_space<vmem>>, vector<16x32xf32>
    %cst = arith.constant dense<0.000000e+00> : vector<16xf32>
    %1 = vector.multi_reduction <add>, %0, %cst [1] : vector<16x32xf32> to vector<16xf32>
    %2 = vector.shape_cast %1 : vector<16xf32> to vector<16x1xf32>
    %cst_1 = arith.constant 3.200000e+01 : f32
    %3 = vector.broadcast %cst_1 : f32 to vector<16x1xf32>
    %4 = arith.divf %2, %3 : vector<16x1xf32>
    %5 = vector.broadcast %4 : vector<16x1xf32> to vector<16x32xf32>
    %6 = arith.subf %0, %5 : vector<16x32xf32>
    %7 = arith.mulf %6, %6 : vector<16x32xf32>
    %cst_2 = arith.constant dense<0.000000e+00> : vector<16xf32>
    %8 = vector.multi_reduction <add>, %7, %cst_2 [1] : vector<16x32xf32> to vector<16xf32>
    %9 = vector.shape_cast %8 : vector<16xf32> to vector<16x1xf32>
    %cst_3 = arith.constant 3.200000e+01 : f32
    %10 = vector.broadcast %cst_3 : f32 to vector<16x1xf32>
    %11 = arith.divf %9, %10 : vector<16x1xf32>
    %12 = vector.broadcast %4 : vector<16x1xf32> to vector<16x32xf32>
    %13 = arith.subf %0, %12 : vector<16x32xf32>
    %cst_4 = arith.constant 9.99999996E-13 : f32
    %14 = vector.broadcast %cst_4 : f32 to vector<16x1xf32>
    %15 = arith.addf %11, %14 : vector<16x1xf32>
    %16 = math.rsqrt %15 : vector<16x1xf32>
    %17 = vector.broadcast %16 : vector<16x1xf32> to vector<16x32xf32>
    %18 = arith.mulf %13, %17 : vector<16x32xf32>
    %c0_5 = arith.constant 0 : index
    %c0_6 = arith.constant 0 : index
    %19 = vector.load %arg2[%c0_5, %c0_6] : memref<1x32xf32, #tpu.memory_space<vmem>>, vector<1x32xf32>
    %20 = vector.broadcast %19 : vector<1x32xf32> to vector<16x32xf32>
    %21 = arith.mulf %18, %20 : vector<16x32xf32>
    %c0_7 = arith.constant 0 : index
    %c0_8 = arith.constant 0 : index
    %22 = vector.load %arg3[%c0_7, %c0_8] : memref<1x32xf32, #tpu.memory_space<vmem>>, vector<1x32xf32>
    %23 = vector.broadcast %22 : vector<1x32xf32> to vector<16x32xf32>
    %24 = arith.addf %21, %23 : vector<16x32xf32>
    %c0_9 = arith.constant 0 : index
    %c0_10 = arith.constant 0 : index
    %25 = vector.load %arg4[%c0_9, %c0_10] : memref<16x32xf32, #tpu.memory_space<vmem>>, vector<16x32xf32>
    tpu.vector_store %arg4[%c0_9, %c0_10], %24 {strides = array<i32>} : memref<16x32xf32, #tpu.memory_space<vmem>>, vector<16x32xf32>,
    return
  }
  func.func @transform_0(%arg0: i32) -> (i32, i32) {
    %c0_i32 = arith.constant 0 : i32
    %c0_i32_0 = arith.constant 0 : i32
    return %arg0, %c0_i32 : i32, i32
  }
  func.func @transform_1(%arg0: i32) -> (i32, i32) {
    %c0_i32 = arith.constant 0 : i32
    %c0_i32_0 = arith.constant 0 : i32
    %c0_i32_1 = arith.constant 0 : i32
    return %c0_i32, %c0_i32_0 : i32, i32
  }
  func.func @transform_2(%arg0: i32) -> (i32, i32) {
    %c0_i32 = arith.constant 0 : i32
    %c0_i32_0 = arith.constant 0 : i32
    %c0_i32_1 = arith.constant 0 : i32
    return %c0_i32, %c0_i32_0 : i32, i32
  }
  func.func @transform_3(%arg0: i32) -> (i32, i32) {
    %c0_i32 = arith.constant 0 : i32
    %c0_i32_0 = arith.constant 0 : i32
    return %arg0, %c0_i32 : i32, i32
  }
}

module attributes {stable_mosaic.version = 11 : i64} {
  func.func @_flash_attn_kernel(%arg0: i32, %arg1: i32, %arg2: i32, %arg3: memref<1x8x32xf32, #tpu.memory_space<vmem>>, %arg4: memref<1x8x32xf32, #tpu.memory_space<vmem>>, %arg5: memref<1x8x32xf32, #tpu.memory_space<vmem>>, %arg6: memref<1x8x32xf32, #tpu.memory_space<vmem>>, %arg7: memref<2x8x1xf32, #tpu.memory_space<vmem>>, %arg8: memref<2x8x1xf32, #tpu.memory_space<vmem>>, %arg9: memref<2x8x16xf32, #tpu.memory_space<vmem>>) attributes {dimension_semantics = [#tpu.dimension_semantics<parallel>, #tpu.dimension_semantics<parallel>, #tpu.dimension_semantics<arbitrary>], iteration_bounds = array<i64: 2, 1, 1>, scalar_prefetch = 0 : i64, scratch_operands = 3 : i64, tpu.core_type = #tpu.core_type<tc>, window_params = [{transform_indices = @transform_0, window_bounds = array<i64: 1, 8, 32>}, {transform_indices = @transform_1, window_bounds = array<i64: 1, 8, 32>}, {transform_indices = @transform_2, window_bounds = array<i64: 1, 8, 32>}, {transform_indices = @transform_3, window_bounds = array<i64: 1, 8, 32>}]} {
    %c0_i32 = arith.constant 0 : i32
    %0 = arith.cmpi eq, %arg2, %c0_i32 : i32
    %1 = arith.extui %0 : i1 to i32
    %c0_i32_0 = arith.constant 0 : i32
    %2 = arith.cmpi ne, %1, %c0_i32_0 : i32
    scf.if %2 {
      %cst_58 = arith.constant 0xFF800000 : f32
      %105 = vector.broadcast %cst_58 : f32 to vector<2x8x1xf32>
      %c0_59 = arith.constant 0 : index
      %c0_60 = arith.constant 0 : index
      %c0_61 = arith.constant 0 : index
      %106 = vector.load %arg7[%c0_59, %c0_60, %c0_61] : memref<2x8x1xf32, #tpu.memory_space<vmem>>, vector<2x8x1xf32>
      tpu.vector_store %arg7[%c0_59, %c0_60, %c0_61], %105 {strides = array<i32>} : memref<2x8x1xf32, #tpu.memory_space<vmem>>, vector<2x8x1xf32>,
      %cst_62 = arith.constant 0.000000e+00 : f32
      %107 = vector.broadcast %cst_62 : f32 to vector<2x8x1xf32>
      %c0_63 = arith.constant 0 : index
      %c0_64 = arith.constant 0 : index
      %c0_65 = arith.constant 0 : index
      %108 = vector.load %arg8[%c0_63, %c0_64, %c0_65] : memref<2x8x1xf32, #tpu.memory_space<vmem>>, vector<2x8x1xf32>
      tpu.vector_store %arg8[%c0_63, %c0_64, %c0_65], %107 {strides = array<i32>} : memref<2x8x1xf32, #tpu.memory_space<vmem>>, vector<2x8x1xf32>,
      %cst_66 = arith.constant 0.000000e+00 : f32
      %109 = vector.broadcast %cst_66 : f32 to vector<2x8x16xf32>
      %c0_67 = arith.constant 0 : index
      %c0_68 = arith.constant 0 : index
      %c0_69 = arith.constant 0 : index
      %110 = vector.load %arg9[%c0_67, %c0_68, %c0_69] : memref<2x8x16xf32, #tpu.memory_space<vmem>>, vector<2x8x16xf32>
      tpu.vector_store %arg9[%c0_67, %c0_68, %c0_69], %109 {strides = array<i32>} : memref<2x8x16xf32, #tpu.memory_space<vmem>>, vector<2x8x16xf32>,
    } else {
    }
    %c0 = arith.constant 0 : index
    %c0_1 = arith.constant 0 : index
    %c0_2 = arith.constant 0 : index
    %3 = vector.load %arg3[%c0, %c0_1, %c0_2] : memref<1x8x32xf32, #tpu.memory_space<vmem>>, vector<1x8x32xf32>
    %4 = vector.shape_cast %3 : vector<1x8x32xf32> to vector<8x32xf32>
    %5 = arith.truncf %4 : vector<8x32xf32> to vector<8x32xbf16>
    %c0_3 = arith.constant 0 : index
    %c0_4 = arith.constant 0 : index
    %c0_5 = arith.constant 0 : index
    %6 = vector.load %arg4[%c0_3, %c0_4, %c0_5] : memref<1x8x32xf32, #tpu.memory_space<vmem>>, vector<1x8x32xf32>
    %7 = vector.shape_cast %6 : vector<1x8x32xf32> to vector<8x32xf32>
    %8 = arith.truncf %7 : vector<8x32xf32> to vector<8x32xbf16>
    %c0_6 = arith.constant 0 : index
    %c0_7 = arith.constant 0 : index
    %c0_8 = arith.constant 0 : index
    %9 = vector.load %arg5[%c0_6, %c0_7, %c0_8] : memref<1x8x32xf32, #tpu.memory_space<vmem>>, vector<1x8x32xf32>
    %10 = vector.shape_cast %9 : vector<1x8x32xf32> to vector<8x32xf32>
    %11 = arith.truncf %10 : vector<8x32xf32> to vector<8x32xbf16>
    %c8_i32 = arith.constant 8 : i32
    %12 = arith.muli %arg1, %c8_i32 : i32
    %c8_i32_9 = arith.constant 8 : i32
    %13 = arith.muli %arg2, %c8_i32_9 : i32
    %14 = tpu.iota {dimensions = array<i32: 0>} : vector<8x8xi32>
    %15 = vector.broadcast %12 : i32 to vector<8x8xi32>
    %16 = arith.addi %14, %15 : vector<8x8xi32>
    %17 = tpu.iota {dimensions = array<i32: 1>} : vector<8x8xi32>
    %18 = vector.broadcast %13 : i32 to vector<8x8xi32>
    %19 = arith.addi %17, %18 : vector<8x8xi32>
    %20 = arith.cmpi sge, %16, %19 : vector<8x8xi32>
    %cst = arith.constant 0.000000e+00 : f32
    %cst_10 = arith.constant -1.000000e+09 : f32
    %21 = vector.broadcast %cst : f32 to vector<8x8xf32>
    %22 = vector.broadcast %cst_10 : f32 to vector<8x8xf32>
    %23 = arith.select %20, %21, %22 : vector<8x8xi1>, vector<8x8xf32>
    %24 = vector.extract_strided_slice %5 {offsets = [0, 0], sizes = [8, 16], strides = [1, 1]} : vector<8x32xbf16> to vector<8x16xbf16>
    %25 = vector.extract_strided_slice %8 {offsets = [0, 0], sizes = [8, 16], strides = [1, 1]} : vector<8x32xbf16> to vector<8x16xbf16>
    %26 = vector.extract_strided_slice %11 {offsets = [0, 0], sizes = [8, 16], strides = [1, 1]} : vector<8x32xbf16> to vector<8x16xbf16>
    %cst_11 = arith.constant dense<0.000000e+00> : vector<8x8xf32>
    %27 = tpu.matmul %24, %25, %cst_11 {dimension_numbers = #tpu.dot_dimension_numbers<[1], [1], [0], [0], [0, 0, 1, 0], [], []>} : vector<8x16xbf16>, vector<8x16xbf16>, vector<8x8xf32> -> vector<8x8xf32>
    %cst_12 = arith.constant 2.500000e-01 : f32
    %28 = vector.broadcast %cst_12 : f32 to vector<8x8xf32>
    %29 = arith.mulf %27, %28 : vector<8x8xf32>
    %30 = arith.addf %29, %23 : vector<8x8xf32>
    %c0_13 = arith.constant 0 : index
    %c0_14 = arith.constant 0 : index
    %c0_15 = arith.constant 0 : index
    %31 = vector.load %arg7[%c0_13, %c0_14, %c0_15] : memref<2x8x1xf32, #tpu.memory_space<vmem>>, vector<1x8x1xf32>
    %32 = vector.shape_cast %31 : vector<1x8x1xf32> to vector<8x1xf32>
    %cst_16 = arith.constant dense<0xFF800000> : vector<8xf32>
    %33 = vector.multi_reduction <maximumf>, %30, %cst_16 [1] : vector<8x8xf32> to vector<8xf32>
    %34 = vector.shape_cast %33 : vector<8xf32> to vector<8x1xf32>
    %35 = arith.maximumf %32, %34 : vector<8x1xf32>
    %36 = arith.subf %32, %35 : vector<8x1xf32>
    %37 = math.exp %36 : vector<8x1xf32>
    %38 = vector.broadcast %35 : vector<8x1xf32> to vector<8x8xf32>
    %39 = arith.subf %30, %38 : vector<8x8xf32>
    %40 = math.exp %39 : vector<8x8xf32>
    %c0_17 = arith.constant 0 : index
    %c0_18 = arith.constant 0 : index
    %c0_19 = arith.constant 0 : index
    %41 = vector.load %arg8[%c0_17, %c0_18, %c0_19] : memref<2x8x1xf32, #tpu.memory_space<vmem>>, vector<1x8x1xf32>
    %42 = vector.shape_cast %41 : vector<1x8x1xf32> to vector<8x1xf32>
    %43 = arith.mulf %37, %42 : vector<8x1xf32>
    %cst_20 = arith.constant dense<0.000000e+00> : vector<8xf32>
    %44 = vector.multi_reduction <add>, %40, %cst_20 [1] : vector<8x8xf32> to vector<8xf32>
    %45 = vector.shape_cast %44 : vector<8xf32> to vector<8x1xf32>
    %46 = arith.addf %43, %45 : vector<8x1xf32>
    %c0_21 = arith.constant 0 : index
    %c0_22 = arith.constant 0 : index
    %c0_23 = arith.constant 0 : index
    %47 = vector.load %arg8[%c0_21, %c0_22, %c0_23] : memref<2x8x1xf32, #tpu.memory_space<vmem>>, vector<1x8x1xf32>
    %48 = vector.shape_cast %47 : vector<1x8x1xf32> to vector<8x1xf32>
    %49 = vector.shape_cast %46 : vector<8x1xf32> to vector<1x8x1xf32>
    tpu.vector_store %arg8[%c0_21, %c0_22, %c0_23], %49 {strides = array<i32>} : memref<2x8x1xf32, #tpu.memory_space<vmem>>, vector<1x8x1xf32>,
    %c0_24 = arith.constant 0 : index
    %c0_25 = arith.constant 0 : index
    %c0_26 = arith.constant 0 : index
    %50 = vector.load %arg9[%c0_24, %c0_25, %c0_26] : memref<2x8x16xf32, #tpu.memory_space<vmem>>, vector<1x8x16xf32>
    %51 = vector.shape_cast %50 : vector<1x8x16xf32> to vector<8x16xf32>
    %52 = vector.broadcast %37 : vector<8x1xf32> to vector<8x16xf32>
    %53 = arith.mulf %52, %51 : vector<8x16xf32>
    %54 = arith.truncf %40 : vector<8x8xf32> to vector<8x8xbf16>
    %cst_27 = arith.constant dense<0.000000e+00> : vector<8x16xf32>
    %55 = tpu.matmul %54, %26, %cst_27 {dimension_numbers = #tpu.dot_dimension_numbers<[1], [0], [0], [1], [0, 0, 1, 1], [], []>} : vector<8x8xbf16>, vector<8x16xbf16>, vector<8x16xf32> -> vector<8x16xf32>
    %56 = arith.addf %53, %55 : vector<8x16xf32>
    %c0_28 = arith.constant 0 : index
    %c0_29 = arith.constant 0 : index
    %c0_30 = arith.constant 0 : index
    %57 = vector.load %arg9[%c0_28, %c0_29, %c0_30] : memref<2x8x16xf32, #tpu.memory_space<vmem>>, vector<1x8x16xf32>
    %58 = vector.shape_cast %57 : vector<1x8x16xf32> to vector<8x16xf32>
    %59 = vector.shape_cast %56 : vector<8x16xf32> to vector<1x8x16xf32>
    tpu.vector_store %arg9[%c0_28, %c0_29, %c0_30], %59 {strides = array<i32>} : memref<2x8x16xf32, #tpu.memory_space<vmem>>, vector<1x8x16xf32>,
    %c0_31 = arith.constant 0 : index
    %c0_32 = arith.constant 0 : index
    %c0_33 = arith.constant 0 : index
    %60 = vector.load %arg7[%c0_31, %c0_32, %c0_33] : memref<2x8x1xf32, #tpu.memory_space<vmem>>, vector<1x8x1xf32>
    %61 = vector.shape_cast %60 : vector<1x8x1xf32> to vector<8x1xf32>
    %62 = vector.shape_cast %35 : vector<8x1xf32> to vector<1x8x1xf32>
    tpu.vector_store %arg7[%c0_31, %c0_32, %c0_33], %62 {strides = array<i32>} : memref<2x8x1xf32, #tpu.memory_space<vmem>>, vector<1x8x1xf32>,
    %63 = vector.extract_strided_slice %5 {offsets = [0, 16], sizes = [8, 16], strides = [1, 1]} : vector<8x32xbf16> to vector<8x16xbf16>
    %64 = vector.extract_strided_slice %8 {offsets = [0, 16], sizes = [8, 16], strides = [1, 1]} : vector<8x32xbf16> to vector<8x16xbf16>
    %65 = vector.extract_strided_slice %11 {offsets = [0, 16], sizes = [8, 16], strides = [1, 1]} : vector<8x32xbf16> to vector<8x16xbf16>
    %cst_34 = arith.constant dense<0.000000e+00> : vector<8x8xf32>
    %66 = tpu.matmul %63, %64, %cst_34 {dimension_numbers = #tpu.dot_dimension_numbers<[1], [1], [0], [0], [0, 0, 1, 0], [], []>} : vector<8x16xbf16>, vector<8x16xbf16>, vector<8x8xf32> -> vector<8x8xf32>
    %cst_35 = arith.constant 2.500000e-01 : f32
    %67 = vector.broadcast %cst_35 : f32 to vector<8x8xf32>
    %68 = arith.mulf %66, %67 : vector<8x8xf32>
    %69 = arith.addf %68, %23 : vector<8x8xf32>
    %c1 = arith.constant 1 : index
    %c0_36 = arith.constant 0 : index
    %c0_37 = arith.constant 0 : index
    %70 = vector.load %arg7[%c1, %c0_36, %c0_37] : memref<2x8x1xf32, #tpu.memory_space<vmem>>, vector<1x8x1xf32>
    %71 = vector.shape_cast %70 : vector<1x8x1xf32> to vector<8x1xf32>
    %cst_38 = arith.constant dense<0xFF800000> : vector<8xf32>
    %72 = vector.multi_reduction <maximumf>, %69, %cst_38 [1] : vector<8x8xf32> to vector<8xf32>
    %73 = vector.shape_cast %72 : vector<8xf32> to vector<8x1xf32>
    %74 = arith.maximumf %71, %73 : vector<8x1xf32>
    %75 = arith.subf %71, %74 : vector<8x1xf32>
    %76 = math.exp %75 : vector<8x1xf32>
    %77 = vector.broadcast %74 : vector<8x1xf32> to vector<8x8xf32>
    %78 = arith.subf %69, %77 : vector<8x8xf32>
    %79 = math.exp %78 : vector<8x8xf32>
    %c1_39 = arith.constant 1 : index
    %c0_40 = arith.constant 0 : index
    %c0_41 = arith.constant 0 : index
    %80 = vector.load %arg8[%c1_39, %c0_40, %c0_41] : memref<2x8x1xf32, #tpu.memory_space<vmem>>, vector<1x8x1xf32>
    %81 = vector.shape_cast %80 : vector<1x8x1xf32> to vector<8x1xf32>
    %82 = arith.mulf %76, %81 : vector<8x1xf32>
    %cst_42 = arith.constant dense<0.000000e+00> : vector<8xf32>
    %83 = vector.multi_reduction <add>, %79, %cst_42 [1] : vector<8x8xf32> to vector<8xf32>
    %84 = vector.shape_cast %83 : vector<8xf32> to vector<8x1xf32>
    %85 = arith.addf %82, %84 : vector<8x1xf32>
    %c1_43 = arith.constant 1 : index
    %c0_44 = arith.constant 0 : index
    %c0_45 = arith.constant 0 : index
    %86 = vector.load %arg8[%c1_43, %c0_44, %c0_45] : memref<2x8x1xf32, #tpu.memory_space<vmem>>, vector<1x8x1xf32>
    %87 = vector.shape_cast %86 : vector<1x8x1xf32> to vector<8x1xf32>
    %88 = vector.shape_cast %85 : vector<8x1xf32> to vector<1x8x1xf32>
    tpu.vector_store %arg8[%c1_43, %c0_44, %c0_45], %88 {strides = array<i32>} : memref<2x8x1xf32, #tpu.memory_space<vmem>>, vector<1x8x1xf32>,
    %c1_46 = arith.constant 1 : index
    %c0_47 = arith.constant 0 : index
    %c0_48 = arith.constant 0 : index
    %89 = vector.load %arg9[%c1_46, %c0_47, %c0_48] : memref<2x8x16xf32, #tpu.memory_space<vmem>>, vector<1x8x16xf32>
    %90 = vector.shape_cast %89 : vector<1x8x16xf32> to vector<8x16xf32>
    %91 = vector.broadcast %76 : vector<8x1xf32> to vector<8x16xf32>
    %92 = arith.mulf %91, %90 : vector<8x16xf32>
    %93 = arith.truncf %79 : vector<8x8xf32> to vector<8x8xbf16>
    %cst_49 = arith.constant dense<0.000000e+00> : vector<8x16xf32>
    %94 = tpu.matmul %93, %65, %cst_49 {dimension_numbers = #tpu.dot_dimension_numbers<[1], [0], [0], [1], [0, 0, 1, 1], [], []>} : vector<8x8xbf16>, vector<8x16xbf16>, vector<8x16xf32> -> vector<8x16xf32>
    %95 = arith.addf %92, %94 : vector<8x16xf32>
    %c1_50 = arith.constant 1 : index
    %c0_51 = arith.constant 0 : index
    %c0_52 = arith.constant 0 : index
    %96 = vector.load %arg9[%c1_50, %c0_51, %c0_52] : memref<2x8x16xf32, #tpu.memory_space<vmem>>, vector<1x8x16xf32>
    %97 = vector.shape_cast %96 : vector<1x8x16xf32> to vector<8x16xf32>
    %98 = vector.shape_cast %95 : vector<8x16xf32> to vector<1x8x16xf32>
    tpu.vector_store %arg9[%c1_50, %c0_51, %c0_52], %98 {strides = array<i32>} : memref<2x8x16xf32, #tpu.memory_space<vmem>>, vector<1x8x16xf32>,
    %c1_53 = arith.constant 1 : index
    %c0_54 = arith.constant 0 : index
    %c0_55 = arith.constant 0 : index
    %99 = vector.load %arg7[%c1_53, %c0_54, %c0_55] : memref<2x8x1xf32, #tpu.memory_space<vmem>>, vector<1x8x1xf32>
    %100 = vector.shape_cast %99 : vector<1x8x1xf32> to vector<8x1xf32>
    %101 = vector.shape_cast %74 : vector<8x1xf32> to vector<1x8x1xf32>
    tpu.vector_store %arg7[%c1_53, %c0_54, %c0_55], %101 {strides = array<i32>} : memref<2x8x1xf32, #tpu.memory_space<vmem>>, vector<1x8x1xf32>,
    %c0_i32_56 = arith.constant 0 : i32
    %102 = arith.cmpi eq, %arg2, %c0_i32_56 : i32
    %103 = arith.extui %102 : i1 to i32
    %c0_i32_57 = arith.constant 0 : i32
    %104 = arith.cmpi ne, %103, %c0_i32_57 : i32
    scf.if %104 {
      %c0_58 = arith.constant 0 : index
      %c0_59 = arith.constant 0 : index
      %c0_60 = arith.constant 0 : index
      %105 = vector.load %arg9[%c0_58, %c0_59, %c0_60] : memref<2x8x16xf32, #tpu.memory_space<vmem>>, vector<1x8x16xf32>
      %106 = vector.shape_cast %105 : vector<1x8x16xf32> to vector<8x16xf32>
      %c0_61 = arith.constant 0 : index
      %c0_62 = arith.constant 0 : index
      %c0_63 = arith.constant 0 : index
      %107 = vector.load %arg8[%c0_61, %c0_62, %c0_63] : memref<2x8x1xf32, #tpu.memory_space<vmem>>, vector<1x8x1xf32>
      %108 = vector.shape_cast %107 : vector<1x8x1xf32> to vector<8x1xf32>
      %109 = tpu.reciprocal %108 {approx = true} : vector<8x1xf32> -> vector<8x1xf32>
      %110 = vector.broadcast %109 : vector<8x1xf32> to vector<8x16xf32>
      %111 = arith.mulf %106, %110 : vector<8x16xf32>
      %c1_64 = arith.constant 1 : index
      %c0_65 = arith.constant 0 : index
      %c0_66 = arith.constant 0 : index
      %112 = vector.load %arg9[%c1_64, %c0_65, %c0_66] : memref<2x8x16xf32, #tpu.memory_space<vmem>>, vector<1x8x16xf32>
      %113 = vector.shape_cast %112 : vector<1x8x16xf32> to vector<8x16xf32>
      %c1_67 = arith.constant 1 : index
      %c0_68 = arith.constant 0 : index
      %c0_69 = arith.constant 0 : index
      %114 = vector.load %arg8[%c1_67, %c0_68, %c0_69] : memref<2x8x1xf32, #tpu.memory_space<vmem>>, vector<1x8x1xf32>
      %115 = vector.shape_cast %114 : vector<1x8x1xf32> to vector<8x1xf32>
      %116 = tpu.reciprocal %115 {approx = true} : vector<8x1xf32> -> vector<8x1xf32>
      %117 = vector.broadcast %116 : vector<8x1xf32> to vector<8x16xf32>
      %118 = arith.mulf %113, %117 : vector<8x16xf32>
      %119 = tpu.concatenate %111, %118 in 1 : vector<8x16xf32>, vector<8x16xf32> -> vector<8x32xf32>
      %c0_70 = arith.constant 0 : index
      %c0_71 = arith.constant 0 : index
      %c0_72 = arith.constant 0 : index
      %120 = vector.load %arg6[%c0_70, %c0_71, %c0_72] : memref<1x8x32xf32, #tpu.memory_space<vmem>>, vector<1x8x32xf32>
      %121 = vector.shape_cast %120 : vector<1x8x32xf32> to vector<8x32xf32>
      %122 = vector.shape_cast %119 : vector<8x32xf32> to vector<1x8x32xf32>
      tpu.vector_store %arg6[%c0_70, %c0_71, %c0_72], %122 {strides = array<i32>} : memref<1x8x32xf32, #tpu.memory_space<vmem>>, vector<1x8x32xf32>,
    } else {
    }
    return
  }
  func.func @transform_0(%arg0: i32, %arg1: i32, %arg2: i32) -> (i32, i32, i32) {
    %c0_i32 = arith.constant 0 : i32
    %c0_i32_0 = arith.constant 0 : i32
    return %arg0, %arg1, %c0_i32 : i32, i32, i32
  }
  func.func @transform_1(%arg0: i32, %arg1: i32, %arg2: i32) -> (i32, i32, i32) {
    %c0_i32 = arith.constant 0 : i32
    %c0_i32_0 = arith.constant 0 : i32
    return %arg0, %arg2, %c0_i32 : i32, i32, i32
  }
  func.func @transform_2(%arg0: i32, %arg1: i32, %arg2: i32) -> (i32, i32, i32) {
    %c0_i32 = arith.constant 0 : i32
    %c0_i32_0 = arith.constant 0 : i32
    return %arg0, %arg2, %c0_i32 : i32, i32, i32
  }
  func.func @transform_3(%arg0: i32, %arg1: i32, %arg2: i32) -> (i32, i32, i32) {
    %c0_i32 = arith.constant 0 : i32
    %c0_i32_0 = arith.constant 0 : i32
    return %arg0, %arg1, %c0_i32 : i32, i32, i32
  }
}

module attributes {stable_mosaic.version = 11 : i64} {
  func.func @_dense_add_ln_kernel(%arg0: i32, %arg1: i32, %arg2: memref<16x32xf32, #tpu.memory_space<vmem>>, %arg3: memref<32x32xbf16, #tpu.memory_space<vmem>>, %arg4: memref<1x32xf32, #tpu.memory_space<vmem>>, %arg5: memref<16x32xf32, #tpu.memory_space<vmem>>, %arg6: memref<1x32xf32, #tpu.memory_space<vmem>>, %arg7: memref<1x32xf32, #tpu.memory_space<vmem>>, %arg8: memref<16x32xf32, #tpu.memory_space<vmem>>, %arg9: memref<16x32xf32, #tpu.memory_space<vmem>>) attributes {dimension_semantics = [#tpu.dimension_semantics<parallel>, #tpu.dimension_semantics<arbitrary>], iteration_bounds = array<i64: 1, 1>, scalar_prefetch = 0 : i64, scratch_operands = 1 : i64, tpu.core_type = #tpu.core_type<tc>, window_params = [{transform_indices = @transform_0, window_bounds = array<i64: 16, 32>}, {transform_indices = @transform_1, window_bounds = array<i64: 32, 32>}, {pipeline_mode = #tpu.pipeline_mode<synchronous>, transform_indices = @transform_2, window_bounds = array<i64: 1, 32>}, {transform_indices = @transform_3, window_bounds = array<i64: 16, 32>}, {pipeline_mode = #tpu.pipeline_mode<synchronous>, transform_indices = @transform_4, window_bounds = array<i64: 1, 32>}, {pipeline_mode = #tpu.pipeline_mode<synchronous>, transform_indices = @transform_5, window_bounds = array<i64: 1, 32>}, {transform_indices = @transform_6, window_bounds = array<i64: 16, 32>}]} {
    %c0_i32 = arith.constant 0 : i32
    %0 = arith.cmpi eq, %arg1, %c0_i32 : i32
    %1 = arith.extui %0 : i1 to i32
    %c0_i32_0 = arith.constant 0 : i32
    %2 = arith.cmpi ne, %1, %c0_i32_0 : i32
    scf.if %2 {
      %cst_10 = arith.constant 0.000000e+00 : f32
      %13 = vector.broadcast %cst_10 : f32 to vector<16x32xf32>
      %c0_11 = arith.constant 0 : index
      %c0_12 = arith.constant 0 : index
      %14 = vector.load %arg9[%c0_11, %c0_12] : memref<16x32xf32, #tpu.memory_space<vmem>>, vector<16x32xf32>
      tpu.vector_store %arg9[%c0_11, %c0_12], %13 {strides = array<i32>} : memref<16x32xf32, #tpu.memory_space<vmem>>, vector<16x32xf32>,
    } else {
    }
    %c0 = arith.constant 0 : index
    %c0_1 = arith.constant 0 : index
    %3 = vector.load %arg9[%c0, %c0_1] : memref<16x32xf32, #tpu.memory_space<vmem>>, vector<16x32xf32>
    %c0_2 = arith.constant 0 : index
    %c0_3 = arith.constant 0 : index
    %4 = vector.load %arg2[%c0_2, %c0_3] : memref<16x32xf32, #tpu.memory_space<vmem>>, vector<16x32xf32>
    %5 = arith.truncf %4 : vector<16x32xf32> to vector<16x32xbf16>
    %c0_4 = arith.constant 0 : index
    %c0_5 = arith.constant 0 : index
    %6 = vector.load %arg3[%c0_4, %c0_5] : memref<32x32xbf16, #tpu.memory_space<vmem>>, vector<32x32xbf16>
    %cst = arith.constant dense<0.000000e+00> : vector<16x32xf32>
    %7 = tpu.matmul %5, %6, %cst {dimension_numbers = #tpu.dot_dimension_numbers<[1], [0], [0], [1], [0, 0, 1, 1], [], []>} : vector<16x32xbf16>, vector<32x32xbf16>, vector<16x32xf32> -> vector<16x32xf32>
    %8 = arith.addf %3, %7 : vector<16x32xf32>
    %c0_6 = arith.constant 0 : index
    %c0_7 = arith.constant 0 : index
    %9 = vector.load %arg9[%c0_6, %c0_7] : memref<16x32xf32, #tpu.memory_space<vmem>>, vector<16x32xf32>
    tpu.vector_store %arg9[%c0_6, %c0_7], %8 {strides = array<i32>} : memref<16x32xf32, #tpu.memory_space<vmem>>, vector<16x32xf32>,
    %c0_i32_8 = arith.constant 0 : i32
    %10 = arith.cmpi eq, %arg1, %c0_i32_8 : i32
    %11 = arith.extui %10 : i1 to i32
    %c0_i32_9 = arith.constant 0 : i32
    %12 = arith.cmpi ne, %11, %c0_i32_9 : i32
    scf.if %12 {
      %c0_10 = arith.constant 0 : index
      %c0_11 = arith.constant 0 : index
      %13 = vector.load %arg9[%c0_10, %c0_11] : memref<16x32xf32, #tpu.memory_space<vmem>>, vector<16x32xf32>
      %c0_12 = arith.constant 0 : index
      %c0_13 = arith.constant 0 : index
      %14 = vector.load %arg4[%c0_12, %c0_13] : memref<1x32xf32, #tpu.memory_space<vmem>>, vector<1x32xf32>
      %15 = vector.broadcast %14 : vector<1x32xf32> to vector<16x32xf32>
      %16 = arith.addf %13, %15 : vector<16x32xf32>
      %c0_14 = arith.constant 0 : index
      %c0_15 = arith.constant 0 : index
      %17 = vector.load %arg5[%c0_14, %c0_15] : memref<16x32xf32, #tpu.memory_space<vmem>>, vector<16x32xf32>
      %18 = arith.addf %16, %17 : vector<16x32xf32>
      %cst_16 = arith.constant dense<0.000000e+00> : vector<16xf32>
      %19 = vector.multi_reduction <add>, %18, %cst_16 [1] : vector<16x32xf32> to vector<16xf32>
      %20 = vector.shape_cast %19 : vector<16xf32> to vector<16x1xf32>
      %cst_17 = arith.constant 3.200000e+01 : f32
      %21 = vector.broadcast %cst_17 : f32 to vector<16x1xf32>
      %22 = arith.divf %20, %21 : vector<16x1xf32>
      %23 = vector.broadcast %22 : vector<16x1xf32> to vector<16x32xf32>
      %24 = arith.subf %18, %23 : vector<16x32xf32>
      %25 = arith.mulf %24, %24 : vector<16x32xf32>
      %cst_18 = arith.constant dense<0.000000e+00> : vector<16xf32>
      %26 = vector.multi_reduction <add>, %25, %cst_18 [1] : vector<16x32xf32> to vector<16xf32>
      %27 = vector.shape_cast %26 : vector<16xf32> to vector<16x1xf32>
      %cst_19 = arith.constant 3.200000e+01 : f32
      %28 = vector.broadcast %cst_19 : f32 to vector<16x1xf32>
      %29 = arith.divf %27, %28 : vector<16x1xf32>
      %30 = vector.broadcast %22 : vector<16x1xf32> to vector<16x32xf32>
      %31 = arith.subf %18, %30 : vector<16x32xf32>
      %cst_20 = arith.constant 9.99999996E-13 : f32
      %32 = vector.broadcast %cst_20 : f32 to vector<16x1xf32>
      %33 = arith.addf %29, %32 : vector<16x1xf32>
      %34 = math.rsqrt %33 : vector<16x1xf32>
      %35 = vector.broadcast %34 : vector<16x1xf32> to vector<16x32xf32>
      %36 = arith.mulf %31, %35 : vector<16x32xf32>
      %c0_21 = arith.constant 0 : index
      %c0_22 = arith.constant 0 : index
      %37 = vector.load %arg6[%c0_21, %c0_22] : memref<1x32xf32, #tpu.memory_space<vmem>>, vector<1x32xf32>
      %38 = vector.broadcast %37 : vector<1x32xf32> to vector<16x32xf32>
      %39 = arith.mulf %36, %38 : vector<16x32xf32>
      %c0_23 = arith.constant 0 : index
      %c0_24 = arith.constant 0 : index
      %40 = vector.load %arg7[%c0_23, %c0_24] : memref<1x32xf32, #tpu.memory_space<vmem>>, vector<1x32xf32>
      %41 = vector.broadcast %40 : vector<1x32xf32> to vector<16x32xf32>
      %42 = arith.addf %39, %41 : vector<16x32xf32>
      %c0_25 = arith.constant 0 : index
      %c0_26 = arith.constant 0 : index
      %43 = vector.load %arg8[%c0_25, %c0_26] : memref<16x32xf32, #tpu.memory_space<vmem>>, vector<16x32xf32>
      tpu.vector_store %arg8[%c0_25, %c0_26], %42 {strides = array<i32>} : memref<16x32xf32, #tpu.memory_space<vmem>>, vector<16x32xf32>,
    } else {
    }
    return
  }
  func.func @transform_0(%arg0: i32, %arg1: i32) -> (i32, i32) {
    %c0_i32 = arith.constant 0 : i32
    return %arg0, %arg1 : i32, i32
  }
  func.func @transform_1(%arg0: i32, %arg1: i32) -> (i32, i32) {
    %c0_i32 = arith.constant 0 : i32
    %c0_i32_0 = arith.constant 0 : i32
    return %arg1, %c0_i32 : i32, i32
  }
  func.func @transform_2(%arg0: i32, %arg1: i32) -> (i32, i32) {
    %c0_i32 = arith.constant 0 : i32
    %c0_i32_0 = arith.constant 0 : i32
    %c0_i32_1 = arith.constant 0 : i32
    return %c0_i32, %c0_i32_0 : i32, i32
  }
  func.func @transform_3(%arg0: i32, %arg1: i32) -> (i32, i32) {
    %c0_i32 = arith.constant 0 : i32
    %c0_i32_0 = arith.constant 0 : i32
    return %arg0, %c0_i32 : i32, i32
  }
  func.func @transform_4(%arg0: i32, %arg1: i32) -> (i32, i32) {
    %c0_i32 = arith.constant 0 : i32
    %c0_i32_0 = arith.constant 0 : i32
    %c0_i32_1 = arith.constant 0 : i32
    return %c0_i32, %c0_i32_0 : i32, i32
  }
  func.func @transform_5(%arg0: i32, %arg1: i32) -> (i32, i32) {
    %c0_i32 = arith.constant 0 : i32
    %c0_i32_0 = arith.constant 0 : i32
    %c0_i32_1 = arith.constant 0 : i32
    return %c0_i32, %c0_i32_0 : i32, i32
  }
  func.func @transform_6(%arg0: i32, %arg1: i32) -> (i32, i32) {
    %c0_i32 = arith.constant 0 : i32
    %c0_i32_0 = arith.constant 0 : i32
    return %arg0, %c0_i32 : i32, i32
  }
}

module attributes {stable_mosaic.version = 11 : i64} {
  func.func @_dense_kernel(%arg0: i32, %arg1: i32, %arg2: i32, %arg3: memref<16x32xf32, #tpu.memory_space<vmem>>, %arg4: memref<32x64xbf16, #tpu.memory_space<vmem>>, %arg5: memref<1x64xf32, #tpu.memory_space<vmem>>, %arg6: memref<16x64xf32, #tpu.memory_space<vmem>>, %arg7: memref<16x64xf32, #tpu.memory_space<vmem>>) attributes {dimension_semantics = [#tpu.dimension_semantics<parallel>, #tpu.dimension_semantics<parallel>, #tpu.dimension_semantics<arbitrary>], iteration_bounds = array<i64: 1, 1, 1>, scalar_prefetch = 0 : i64, scratch_operands = 1 : i64, tpu.core_type = #tpu.core_type<tc>, window_params = [{transform_indices = @transform_0, window_bounds = array<i64: 16, 32>}, {transform_indices = @transform_1, window_bounds = array<i64: 32, 64>}, {transform_indices = @transform_2, window_bounds = array<i64: 1, 64>}, {transform_indices = @transform_3, window_bounds = array<i64: 16, 64>}]} {
    %c0_i32 = arith.constant 0 : i32
    %0 = arith.cmpi eq, %arg2, %c0_i32 : i32
    %1 = arith.extui %0 : i1 to i32
    %c0_i32_0 = arith.constant 0 : i32
    %2 = arith.cmpi ne, %1, %c0_i32_0 : i32
    scf.if %2 {
      %cst_10 = arith.constant 0.000000e+00 : f32
      %13 = vector.broadcast %cst_10 : f32 to vector<16x64xf32>
      %c0_11 = arith.constant 0 : index
      %c0_12 = arith.constant 0 : index
      %14 = vector.load %arg7[%c0_11, %c0_12] : memref<16x64xf32, #tpu.memory_space<vmem>>, vector<16x64xf32>
      tpu.vector_store %arg7[%c0_11, %c0_12], %13 {strides = array<i32>} : memref<16x64xf32, #tpu.memory_space<vmem>>, vector<16x64xf32>,
    } else {
    }
    %c0 = arith.constant 0 : index
    %c0_1 = arith.constant 0 : index
    %3 = vector.load %arg7[%c0, %c0_1] : memref<16x64xf32, #tpu.memory_space<vmem>>, vector<16x64xf32>
    %c0_2 = arith.constant 0 : index
    %c0_3 = arith.constant 0 : index
    %4 = vector.load %arg3[%c0_2, %c0_3] : memref<16x32xf32, #tpu.memory_space<vmem>>, vector<16x32xf32>
    %5 = arith.truncf %4 : vector<16x32xf32> to vector<16x32xbf16>
    %c0_4 = arith.constant 0 : index
    %c0_5 = arith.constant 0 : index
    %6 = vector.load %arg4[%c0_4, %c0_5] : memref<32x64xbf16, #tpu.memory_space<vmem>>, vector<32x64xbf16>
    %cst = arith.constant dense<0.000000e+00> : vector<16x64xf32>
    %7 = tpu.matmul %5, %6, %cst {dimension_numbers = #tpu.dot_dimension_numbers<[1], [0], [0], [1], [0, 0, 1, 1], [], []>} : vector<16x32xbf16>, vector<32x64xbf16>, vector<16x64xf32> -> vector<16x64xf32>
    %8 = arith.addf %3, %7 : vector<16x64xf32>
    %c0_6 = arith.constant 0 : index
    %c0_7 = arith.constant 0 : index
    %9 = vector.load %arg7[%c0_6, %c0_7] : memref<16x64xf32, #tpu.memory_space<vmem>>, vector<16x64xf32>
    tpu.vector_store %arg7[%c0_6, %c0_7], %8 {strides = array<i32>} : memref<16x64xf32, #tpu.memory_space<vmem>>, vector<16x64xf32>,
    %c0_i32_8 = arith.constant 0 : i32
    %10 = arith.cmpi eq, %arg2, %c0_i32_8 : i32
    %11 = arith.extui %10 : i1 to i32
    %c0_i32_9 = arith.constant 0 : i32
    %12 = arith.cmpi ne, %11, %c0_i32_9 : i32
    scf.if %12 {
      %c0_10 = arith.constant 0 : index
      %c0_11 = arith.constant 0 : index
      %13 = vector.load %arg7[%c0_10, %c0_11] : memref<16x64xf32, #tpu.memory_space<vmem>>, vector<16x64xf32>
      %c0_12 = arith.constant 0 : index
      %c0_13 = arith.constant 0 : index
      %14 = vector.load %arg5[%c0_12, %c0_13] : memref<1x64xf32, #tpu.memory_space<vmem>>, vector<1x64xf32>
      %15 = vector.broadcast %14 : vector<1x64xf32> to vector<16x64xf32>
      %16 = arith.addf %13, %15 : vector<16x64xf32>
      %17 = arith.mulf %16, %16 : vector<16x64xf32>
      %18 = arith.mulf %16, %17 : vector<16x64xf32>
      %cst_14 = arith.constant 4.471500e-02 : f32
      %19 = vector.broadcast %cst_14 : f32 to vector<16x64xf32>
      %20 = arith.mulf %19, %18 : vector<16x64xf32>
      %21 = arith.addf %16, %20 : vector<16x64xf32>
      %cst_15 = arith.constant 0.797884583 : f32
      %22 = vector.broadcast %cst_15 : f32 to vector<16x64xf32>
      %23 = arith.mulf %22, %21 : vector<16x64xf32>
      %24 = math.tanh %23 : vector<16x64xf32>
      %cst_16 = arith.constant 1.000000e+00 : f32
      %25 = vector.broadcast %cst_16 : f32 to vector<16x64xf32>
      %26 = arith.addf %25, %24 : vector<16x64xf32>
      %cst_17 = arith.constant 5.000000e-01 : f32
      %27 = vector.broadcast %cst_17 : f32 to vector<16x64xf32>
      %28 = arith.mulf %27, %26 : vector<16x64xf32>
      %29 = arith.mulf %16, %28 : vector<16x64xf32>
      %c0_18 = arith.constant 0 : index
      %c0_19 = arith.constant 0 : index
      %30 = vector.load %arg6[%c0_18, %c0_19] : memref<16x64xf32, #tpu.memory_space<vmem>>, vector<16x64xf32>
      tpu.vector_store %arg6[%c0_18, %c0_19], %29 {strides = array<i32>} : memref<16x64xf32, #tpu.memory_space<vmem>>, vector<16x64xf32>,
    } else {
    }
    return
  }
  func.func @transform_0(%arg0: i32, %arg1: i32, %arg2: i32) -> (i32, i32) {
    %c0_i32 = arith.constant 0 : i32
    return %arg0, %arg2 : i32, i32
  }
  func.func @transform_1(%arg0: i32, %arg1: i32, %arg2: i32) -> (i32, i32) {
    %c0_i32 = arith.constant 0 : i32
    return %arg2, %arg1 : i32, i32
  }
  func.func @transform_2(%arg0: i32, %arg1: i32, %arg2: i32) -> (i32, i32) {
    %c0_i32 = arith.constant 0 : i32
    %c0_i32_0 = arith.constant 0 : i32
    return %c0_i32, %arg1 : i32, i32
  }
  func.func @transform_3(%arg0: i32, %arg1: i32, %arg2: i32) -> (i32, i32) {
    %c0_i32 = arith.constant 0 : i32
    return %arg0, %arg1 : i32, i32
  }
}

module attributes {stable_mosaic.version = 11 : i64} {
  func.func @_cls_ce_kernel(%arg0: i32, %arg1: i32, %arg2: memref<16x32xf32, #tpu.memory_space<vmem>>, %arg3: memref<32x64xbf16, #tpu.memory_space<vmem>>, %arg4: memref<1x64xf32, #tpu.memory_space<vmem>>, %arg5: memref<16x1xi32, #tpu.memory_space<vmem>>, %arg6: memref<16x1xf32, #tpu.memory_space<vmem>>, %arg7: memref<16x1xf32, #tpu.memory_space<vmem>>, %arg8: memref<16x1xf32, #tpu.memory_space<vmem>>, %arg9: memref<16x1xf32, #tpu.memory_space<vmem>>) attributes {dimension_semantics = [#tpu.dimension_semantics<parallel>, #tpu.dimension_semantics<arbitrary>], iteration_bounds = array<i64: 1, 1>, scalar_prefetch = 0 : i64, scratch_operands = 3 : i64, tpu.core_type = #tpu.core_type<tc>, window_params = [{transform_indices = @transform_0, window_bounds = array<i64: 16, 32>}, {transform_indices = @transform_1, window_bounds = array<i64: 32, 64>}, {transform_indices = @transform_2, window_bounds = array<i64: 1, 64>}, {transform_indices = @transform_3, window_bounds = array<i64: 16, 1>}, {transform_indices = @transform_4, window_bounds = array<i64: 16, 1>}]} {
    %c0_i32 = arith.constant 0 : i32
    %0 = arith.cmpi eq, %arg1, %c0_i32 : i32
    %1 = arith.extui %0 : i1 to i32
    %c0_i32_0 = arith.constant 0 : i32
    %2 = arith.cmpi ne, %1, %c0_i32_0 : i32
    scf.if %2 {
      %cst_26 = arith.constant 0xFF800000 : f32
      %43 = vector.broadcast %cst_26 : f32 to vector<16x1xf32>
      %c0_27 = arith.constant 0 : index
      %c0_28 = arith.constant 0 : index
      %44 = vector.load %arg7[%c0_27, %c0_28] : memref<16x1xf32, #tpu.memory_space<vmem>>, vector<16x1xf32>
      tpu.vector_store %arg7[%c0_27, %c0_28], %43 {strides = array<i32>} : memref<16x1xf32, #tpu.memory_space<vmem>>, vector<16x1xf32>,
      %cst_29 = arith.constant 0.000000e+00 : f32
      %45 = vector.broadcast %cst_29 : f32 to vector<16x1xf32>
      %c0_30 = arith.constant 0 : index
      %c0_31 = arith.constant 0 : index
      %46 = vector.load %arg8[%c0_30, %c0_31] : memref<16x1xf32, #tpu.memory_space<vmem>>, vector<16x1xf32>
      tpu.vector_store %arg8[%c0_30, %c0_31], %45 {strides = array<i32>} : memref<16x1xf32, #tpu.memory_space<vmem>>, vector<16x1xf32>,
      %cst_32 = arith.constant 0.000000e+00 : f32
      %47 = vector.broadcast %cst_32 : f32 to vector<16x1xf32>
      %c0_33 = arith.constant 0 : index
      %c0_34 = arith.constant 0 : index
      %48 = vector.load %arg9[%c0_33, %c0_34] : memref<16x1xf32, #tpu.memory_space<vmem>>, vector<16x1xf32>
      tpu.vector_store %arg9[%c0_33, %c0_34], %47 {strides = array<i32>} : memref<16x1xf32, #tpu.memory_space<vmem>>, vector<16x1xf32>,
    } else {
    }
    %c0 = arith.constant 0 : index
    %c0_1 = arith.constant 0 : index
    %3 = vector.load %arg2[%c0, %c0_1] : memref<16x32xf32, #tpu.memory_space<vmem>>, vector<16x32xf32>
    %4 = arith.truncf %3 : vector<16x32xf32> to vector<16x32xbf16>
    %c0_2 = arith.constant 0 : index
    %c0_3 = arith.constant 0 : index
    %5 = vector.load %arg3[%c0_2, %c0_3] : memref<32x64xbf16, #tpu.memory_space<vmem>>, vector<32x64xbf16>
    %cst = arith.constant dense<0.000000e+00> : vector<16x64xf32>
    %6 = tpu.matmul %4, %5, %cst {dimension_numbers = #tpu.dot_dimension_numbers<[1], [0], [0], [1], [0, 0, 1, 1], [], []>} : vector<16x32xbf16>, vector<32x64xbf16>, vector<16x64xf32> -> vector<16x64xf32>
    %c0_4 = arith.constant 0 : index
    %c0_5 = arith.constant 0 : index
    %7 = vector.load %arg4[%c0_4, %c0_5] : memref<1x64xf32, #tpu.memory_space<vmem>>, vector<1x64xf32>
    %8 = vector.broadcast %7 : vector<1x64xf32> to vector<16x64xf32>
    %9 = arith.addf %6, %8 : vector<16x64xf32>
    %10 = tpu.iota {dimensions = array<i32: 1>} : vector<16x64xi32>
    %c64_i32 = arith.constant 64 : i32
    %11 = arith.muli %arg1, %c64_i32 : i32
    %12 = vector.broadcast %11 : i32 to vector<16x64xi32>
    %13 = arith.addi %10, %12 : vector<16x64xi32>
    %c0_6 = arith.constant 0 : index
    %c0_7 = arith.constant 0 : index
    %14 = vector.load %arg5[%c0_6, %c0_7] : memref<16x1xi32, #tpu.memory_space<vmem>>, vector<16x1xi32>
    %c0_8 = arith.constant 0 : index
    %c0_9 = arith.constant 0 : index
    %15 = vector.load %arg9[%c0_8, %c0_9] : memref<16x1xf32, #tpu.memory_space<vmem>>, vector<16x1xf32>
    %16 = vector.broadcast %14 : vector<16x1xi32> to vector<16x64xi32>
    %17 = arith.cmpi eq, %13, %16 : vector<16x64xi32>
    %cst_10 = arith.constant 0.000000e+00 : f32
    %18 = vector.broadcast %cst_10 : f32 to vector<16x64xf32>
    %19 = arith.select %17, %9, %18 : vector<16x64xi1>, vector<16x64xf32>
    %cst_11 = arith.constant dense<0.000000e+00> : vector<16xf32>
    %20 = vector.multi_reduction <add>, %19, %cst_11 [1] : vector<16x64xf32> to vector<16xf32>
    %21 = vector.shape_cast %20 : vector<16xf32> to vector<16x1xf32>
    %22 = arith.addf %15, %21 : vector<16x1xf32>
    %c0_12 = arith.constant 0 : index
    %c0_13 = arith.constant 0 : index
    %23 = vector.load %arg9[%c0_12, %c0_13] : memref<16x1xf32, #tpu.memory_space<vmem>>, vector<16x1xf32>
    tpu.vector_store %arg9[%c0_12, %c0_13], %22 {strides = array<i32>} : memref<16x1xf32, #tpu.memory_space<vmem>>, vector<16x1xf32>,
    %c0_14 = arith.constant 0 : index
    %c0_15 = arith.constant 0 : index
    %24 = vector.load %arg7[%c0_14, %c0_15] : memref<16x1xf32, #tpu.memory_space<vmem>>, vector<16x1xf32>
    %cst_16 = arith.constant dense<0xFF800000> : vector<16xf32>
    %25 = vector.multi_reduction <maximumf>, %9, %cst_16 [1] : vector<16x64xf32> to vector<16xf32>
    %26 = vector.shape_cast %25 : vector<16xf32> to vector<16x1xf32>
    %27 = arith.maximumf %24, %26 : vector<16x1xf32>
    %28 = arith.subf %24, %27 : vector<16x1xf32>
    %29 = math.exp %28 : vector<16x1xf32>
    %c0_17 = arith.constant 0 : index
    %c0_18 = arith.constant 0 : index
    %30 = vector.load %arg8[%c0_17, %c0_18] : memref<16x1xf32, #tpu.memory_space<vmem>>, vector<16x1xf32>
    %31 = arith.mulf %29, %30 : vector<16x1xf32>
    %32 = vector.broadcast %27 : vector<16x1xf32> to vector<16x64xf32>
    %33 = arith.subf %9, %32 : vector<16x64xf32>
    %34 = math.exp %33 : vector<16x64xf32>
    %cst_19 = arith.constant dense<0.000000e+00> : vector<16xf32>
    %35 = vector.multi_reduction <add>, %34, %cst_19 [1] : vector<16x64xf32> to vector<16xf32>
    %36 = vector.shape_cast %35 : vector<16xf32> to vector<16x1xf32>
    %37 = arith.addf %31, %36 : vector<16x1xf32>
    %c0_20 = arith.constant 0 : index
    %c0_21 = arith.constant 0 : index
    %38 = vector.load %arg8[%c0_20, %c0_21] : memref<16x1xf32, #tpu.memory_space<vmem>>, vector<16x1xf32>
    tpu.vector_store %arg8[%c0_20, %c0_21], %37 {strides = array<i32>} : memref<16x1xf32, #tpu.memory_space<vmem>>, vector<16x1xf32>,
    %c0_22 = arith.constant 0 : index
    %c0_23 = arith.constant 0 : index
    %39 = vector.load %arg7[%c0_22, %c0_23] : memref<16x1xf32, #tpu.memory_space<vmem>>, vector<16x1xf32>
    tpu.vector_store %arg7[%c0_22, %c0_23], %27 {strides = array<i32>} : memref<16x1xf32, #tpu.memory_space<vmem>>, vector<16x1xf32>,
    %c0_i32_24 = arith.constant 0 : i32
    %40 = arith.cmpi eq, %arg1, %c0_i32_24 : i32
    %41 = arith.extui %40 : i1 to i32
    %c0_i32_25 = arith.constant 0 : i32
    %42 = arith.cmpi ne, %41, %c0_i32_25 : i32
    scf.if %42 {
      %c0_26 = arith.constant 0 : index
      %c0_27 = arith.constant 0 : index
      %43 = vector.load %arg7[%c0_26, %c0_27] : memref<16x1xf32, #tpu.memory_space<vmem>>, vector<16x1xf32>
      %c0_28 = arith.constant 0 : index
      %c0_29 = arith.constant 0 : index
      %44 = vector.load %arg8[%c0_28, %c0_29] : memref<16x1xf32, #tpu.memory_space<vmem>>, vector<16x1xf32>
      %45 = math.log %44 : vector<16x1xf32>
      %46 = arith.addf %43, %45 : vector<16x1xf32>
      %c0_30 = arith.constant 0 : index
      %c0_31 = arith.constant 0 : index
      %47 = vector.load %arg9[%c0_30, %c0_31] : memref<16x1xf32, #tpu.memory_space<vmem>>, vector<16x1xf32>
      %48 = arith.subf %46, %47 : vector<16x1xf32>
      %c0_32 = arith.constant 0 : index
      %c0_33 = arith.constant 0 : index
      %49 = vector.load %arg6[%c0_32, %c0_33] : memref<16x1xf32, #tpu.memory_space<vmem>>, vector<16x1xf32>
      tpu.vector_store %arg6[%c0_32, %c0_33], %48 {strides = array<i32>} : memref<16x1xf32, #tpu.memory_space<vmem>>, vector<16x1xf32>,
    } else {
    }
    return
  }
  func.func @transform_0(%arg0: i32, %arg1: i32) -> (i32, i32) {
    %c0_i32 = arith.constant 0 : i32
    %c0_i32_0 = arith.constant 0 : i32
    return %arg0, %c0_i32 : i32, i32
  }
  func.func @transform_1(%arg0: i32, %arg1: i32) -> (i32, i32) {
    %c0_i32 = arith.constant 0 : i32
    %c0_i32_0 = arith.constant 0 : i32
    return %c0_i32, %arg1 : i32, i32
  }
  func.func @transform_2(%arg0: i32, %arg1: i32) -> (i32, i32) {
    %c0_i32 = arith.constant 0 : i32
    %c0_i32_0 = arith.constant 0 : i32
    return %c0_i32, %arg1 : i32, i32
  }
  func.func @transform_3(%arg0: i32, %arg1: i32) -> (i32, i32) {
    %c0_i32 = arith.constant 0 : i32
    %c0_i32_0 = arith.constant 0 : i32
    return %arg0, %c0_i32 : i32, i32
  }
  func.func @transform_4(%arg0: i32, %arg1: i32) -> (i32, i32) {
    %c0_i32 = arith.constant 0 : i32
    %c0_i32_0 = arith.constant 0 : i32
    return %arg0, %c0_i32 : i32, i32
  }
}

module attributes {stable_mosaic.version = 11 : i64} {
  func.func @_dense_add_ln_kernel(%arg0: i32, %arg1: i32, %arg2: memref<16x64xf32, #tpu.memory_space<vmem>>, %arg3: memref<64x32xbf16, #tpu.memory_space<vmem>>, %arg4: memref<1x32xf32, #tpu.memory_space<vmem>>, %arg5: memref<16x32xf32, #tpu.memory_space<vmem>>, %arg6: memref<1x32xf32, #tpu.memory_space<vmem>>, %arg7: memref<1x32xf32, #tpu.memory_space<vmem>>, %arg8: memref<16x32xf32, #tpu.memory_space<vmem>>, %arg9: memref<16x32xf32, #tpu.memory_space<vmem>>) attributes {dimension_semantics = [#tpu.dimension_semantics<parallel>, #tpu.dimension_semantics<arbitrary>], iteration_bounds = array<i64: 1, 1>, scalar_prefetch = 0 : i64, scratch_operands = 1 : i64, tpu.core_type = #tpu.core_type<tc>, window_params = [{transform_indices = @transform_0, window_bounds = array<i64: 16, 64>}, {transform_indices = @transform_1, window_bounds = array<i64: 64, 32>}, {pipeline_mode = #tpu.pipeline_mode<synchronous>, transform_indices = @transform_2, window_bounds = array<i64: 1, 32>}, {transform_indices = @transform_3, window_bounds = array<i64: 16, 32>}, {pipeline_mode = #tpu.pipeline_mode<synchronous>, transform_indices = @transform_4, window_bounds = array<i64: 1, 32>}, {pipeline_mode = #tpu.pipeline_mode<synchronous>, transform_indices = @transform_5, window_bounds = array<i64: 1, 32>}, {transform_indices = @transform_6, window_bounds = array<i64: 16, 32>}]} {
    %c0_i32 = arith.constant 0 : i32
    %0 = arith.cmpi eq, %arg1, %c0_i32 : i32
    %1 = arith.extui %0 : i1 to i32
    %c0_i32_0 = arith.constant 0 : i32
    %2 = arith.cmpi ne, %1, %c0_i32_0 : i32
    scf.if %2 {
      %cst_10 = arith.constant 0.000000e+00 : f32
      %13 = vector.broadcast %cst_10 : f32 to vector<16x32xf32>
      %c0_11 = arith.constant 0 : index
      %c0_12 = arith.constant 0 : index
      %14 = vector.load %arg9[%c0_11, %c0_12] : memref<16x32xf32, #tpu.memory_space<vmem>>, vector<16x32xf32>
      tpu.vector_store %arg9[%c0_11, %c0_12], %13 {strides = array<i32>} : memref<16x32xf32, #tpu.memory_space<vmem>>, vector<16x32xf32>,
    } else {
    }
    %c0 = arith.constant 0 : index
    %c0_1 = arith.constant 0 : index
    %3 = vector.load %arg9[%c0, %c0_1] : memref<16x32xf32, #tpu.memory_space<vmem>>, vector<16x32xf32>
    %c0_2 = arith.constant 0 : index
    %c0_3 = arith.constant 0 : index
    %4 = vector.load %arg2[%c0_2, %c0_3] : memref<16x64xf32, #tpu.memory_space<vmem>>, vector<16x64xf32>
    %5 = arith.truncf %4 : vector<16x64xf32> to vector<16x64xbf16>
    %c0_4 = arith.constant 0 : index
    %c0_5 = arith.constant 0 : index
    %6 = vector.load %arg3[%c0_4, %c0_5] : memref<64x32xbf16, #tpu.memory_space<vmem>>, vector<64x32xbf16>
    %cst = arith.constant dense<0.000000e+00> : vector<16x32xf32>
    %7 = tpu.matmul %5, %6, %cst {dimension_numbers = #tpu.dot_dimension_numbers<[1], [0], [0], [1], [0, 0, 1, 1], [], []>} : vector<16x64xbf16>, vector<64x32xbf16>, vector<16x32xf32> -> vector<16x32xf32>
    %8 = arith.addf %3, %7 : vector<16x32xf32>
    %c0_6 = arith.constant 0 : index
    %c0_7 = arith.constant 0 : index
    %9 = vector.load %arg9[%c0_6, %c0_7] : memref<16x32xf32, #tpu.memory_space<vmem>>, vector<16x32xf32>
    tpu.vector_store %arg9[%c0_6, %c0_7], %8 {strides = array<i32>} : memref<16x32xf32, #tpu.memory_space<vmem>>, vector<16x32xf32>,
    %c0_i32_8 = arith.constant 0 : i32
    %10 = arith.cmpi eq, %arg1, %c0_i32_8 : i32
    %11 = arith.extui %10 : i1 to i32
    %c0_i32_9 = arith.constant 0 : i32
    %12 = arith.cmpi ne, %11, %c0_i32_9 : i32
    scf.if %12 {
      %c0_10 = arith.constant 0 : index
      %c0_11 = arith.constant 0 : index
      %13 = vector.load %arg9[%c0_10, %c0_11] : memref<16x32xf32, #tpu.memory_space<vmem>>, vector<16x32xf32>
      %c0_12 = arith.constant 0 : index
      %c0_13 = arith.constant 0 : index
      %14 = vector.load %arg4[%c0_12, %c0_13] : memref<1x32xf32, #tpu.memory_space<vmem>>, vector<1x32xf32>
      %15 = vector.broadcast %14 : vector<1x32xf32> to vector<16x32xf32>
      %16 = arith.addf %13, %15 : vector<16x32xf32>
      %c0_14 = arith.constant 0 : index
      %c0_15 = arith.constant 0 : index
      %17 = vector.load %arg5[%c0_14, %c0_15] : memref<16x32xf32, #tpu.memory_space<vmem>>, vector<16x32xf32>
      %18 = arith.addf %16, %17 : vector<16x32xf32>
      %cst_16 = arith.constant dense<0.000000e+00> : vector<16xf32>
      %19 = vector.multi_reduction <add>, %18, %cst_16 [1] : vector<16x32xf32> to vector<16xf32>
      %20 = vector.shape_cast %19 : vector<16xf32> to vector<16x1xf32>
      %cst_17 = arith.constant 3.200000e+01 : f32
      %21 = vector.broadcast %cst_17 : f32 to vector<16x1xf32>
      %22 = arith.divf %20, %21 : vector<16x1xf32>
      %23 = vector.broadcast %22 : vector<16x1xf32> to vector<16x32xf32>
      %24 = arith.subf %18, %23 : vector<16x32xf32>
      %25 = arith.mulf %24, %24 : vector<16x32xf32>
      %cst_18 = arith.constant dense<0.000000e+00> : vector<16xf32>
      %26 = vector.multi_reduction <add>, %25, %cst_18 [1] : vector<16x32xf32> to vector<16xf32>
      %27 = vector.shape_cast %26 : vector<16xf32> to vector<16x1xf32>
      %cst_19 = arith.constant 3.200000e+01 : f32
      %28 = vector.broadcast %cst_19 : f32 to vector<16x1xf32>
      %29 = arith.divf %27, %28 : vector<16x1xf32>
      %30 = vector.broadcast %22 : vector<16x1xf32> to vector<16x32xf32>
      %31 = arith.subf %18, %30 : vector<16x32xf32>
      %cst_20 = arith.constant 9.99999996E-13 : f32
      %32 = vector.broadcast %cst_20 : f32 to vector<16x1xf32>
      %33 = arith.addf %29, %32 : vector<16x1xf32>
      %34 = math.rsqrt %33 : vector<16x1xf32>
      %35 = vector.broadcast %34 : vector<16x1xf32> to vector<16x32xf32>
      %36 = arith.mulf %31, %35 : vector<16x32xf32>
      %c0_21 = arith.constant 0 : index
      %c0_22 = arith.constant 0 : index
      %37 = vector.load %arg6[%c0_21, %c0_22] : memref<1x32xf32, #tpu.memory_space<vmem>>, vector<1x32xf32>
      %38 = vector.broadcast %37 : vector<1x32xf32> to vector<16x32xf32>
      %39 = arith.mulf %36, %38 : vector<16x32xf32>
      %c0_23 = arith.constant 0 : index
      %c0_24 = arith.constant 0 : index
      %40 = vector.load %arg7[%c0_23, %c0_24] : memref<1x32xf32, #tpu.memory_space<vmem>>, vector<1x32xf32>
      %41 = vector.broadcast %40 : vector<1x32xf32> to vector<16x32xf32>
      %42 = arith.addf %39, %41 : vector<16x32xf32>
      %c0_25 = arith.constant 0 : index
      %c0_26 = arith.constant 0 : index
      %43 = vector.load %arg8[%c0_25, %c0_26] : memref<16x32xf32, #tpu.memory_space<vmem>>, vector<16x32xf32>
      tpu.vector_store %arg8[%c0_25, %c0_26], %42 {strides = array<i32>} : memref<16x32xf32, #tpu.memory_space<vmem>>, vector<16x32xf32>,
    } else {
    }
    return
  }
  func.func @transform_0(%arg0: i32, %arg1: i32) -> (i32, i32) {
    %c0_i32 = arith.constant 0 : i32
    return %arg0, %arg1 : i32, i32
  }
  func.func @transform_1(%arg0: i32, %arg1: i32) -> (i32, i32) {
    %c0_i32 = arith.constant 0 : i32
    %c0_i32_0 = arith.constant 0 : i32
    return %arg1, %c0_i32 : i32, i32
  }
  func.func @transform_2(%arg0: i32, %arg1: i32) -> (i32, i32) {
    %c0_i32 = arith.constant 0 : i32
    %c0_i32_0 = arith.constant 0 : i32
    %c0_i32_1 = arith.constant 0 : i32
    return %c0_i32, %c0_i32_0 : i32, i32
  }
  func.func @transform_3(%arg0: i32, %arg1: i32) -> (i32, i32) {
    %c0_i32 = arith.constant 0 : i32
    %c0_i32_0 = arith.constant 0 : i32
    return %arg0, %c0_i32 : i32, i32
  }
  func.func @transform_4(%arg0: i32, %arg1: i32) -> (i32, i32) {
    %c0_i32 = arith.constant 0 : i32
    %c0_i32_0 = arith.constant 0 : i32
    %c0_i32_1 = arith.constant 0 : i32
    return %c0_i32, %c0_i32_0 : i32, i32
  }
  func.func @transform_5(%arg0: i32, %arg1: i32) -> (i32, i32) {
    %c0_i32 = arith.constant 0 : i32
    %c0_i32_0 = arith.constant 0 : i32
    %c0_i32_1 = arith.constant 0 : i32
    return %c0_i32, %c0_i32_0 : i32, i32
  }
  func.func @transform_6(%arg0: i32, %arg1: i32) -> (i32, i32) {
    %c0_i32 = arith.constant 0 : i32
    %c0_i32_0 = arith.constant 0 : i32
    return %arg0, %c0_i32 : i32, i32
  }
}

</mosaic_0001>

<bundles_post_ra>
// kernel: language_model_forward.13
= control target key start
LH: loop header
LB: loop body
LE: loop exit
PB: predicated region body
PF: predicated region fallthrough
CT: control target
= control target key end

     0   :  { %vm19_vm0 = vcmask 785408   ;;  %v96_v1 = vmov 0.0   ;;  %vm43_vm1 = vcmask 261120   ;;  %s144_s1 = inlined_call_operand.vmem [shape: bf16[32,96], index: 1, kind: input, shape index: {}]   ;;  %s145_s0 = inlined_call_operand.vmem [shape: f32[16,32], index: 0, kind: input, shape index: {}]   ;;  %s146_s2 = inlined_call_operand.vmem [shape: f32[1,96], index: 2, kind: input, shape index: {}]   ;;  %s147_s3 = inlined_call_operand.vmem [shape: f32[16,96], index: 3, kind: output, shape index: {}]  }
   0x1   :  { %v93_v0 = vld [vmem:[%s144_s1 + $0x8] sm:$0xff]  ;;  %20 = vst.msk [vmem:[#allocation2] sm:$0xff] %vm19_vm0, %v96_v1  ;;  %v92_v2 = vld [vmem:[%s144_s1] sm:$0xff] }
   0x2   :  { %21 = vst.msk [vmem:[#allocation2 + $0x8] sm:$0xff] %vm19_vm0, %v96_v1  ;;  %53 = vmatpush.bf16.msra.mxu0 %v93_v0  ;;  %v24_v3 = vld [vmem:[%s145_s0] sm:$0xff]  ;;  %v25_v4 = vld [vmem:[%s145_s0 + $0x8] sm:$0xff] }
   0x3   :  { %v26_v5 = vpack.c.bf16 %v25_v4, %v24_v3  ;;  %v95_v10 = vld [vmem:[%s146_s2] ss:$0 sm:$0xff] }
   0x6   :  { %54 = vmatpush.bf16.msra.mxu0 %v92_v2 }
   0x8   :  { %v22_v6 = vld [vmem:[#allocation2] sm:$0xff] }
   0x9   :  { %91 = vmatmul.msk.bf16.vlgmr.msra.gmra.mxu0 %vm43_vm1, %v26_v5  ;;  %v23_v9 = vld [vmem:[#allocation2 + $0x8] sm:$0xff] }
  0x86   :  { %v56_v7 = vpop.f32.mrf.mxu0 }
  0x87   :  { %v61_v8 = vadd.f32 %v56_v7, %v22_v6 }
  0x89   :  { %64 = vst.msk [vmem:[#allocation2] sm:$0xff] %vm19_vm0, %v61_v8 }
  0x8e   :  { %v58_v11 = vpop.f32.mrf.mxu0 }
  0x8f   :  { %v62_v12 = vadd.f32 %v58_v11, %v23_v9 }
  0x90   :  { %v69_v13 = vld [vmem:[#allocation2] sm:$0xff] }
  0x91   :  { %v75_v14 = vadd.f32 %v95_v10, %v69_v13  ;;  %65 = vst.msk [vmem:[#allocation2 + $0x8] sm:$0xff] %vm19_vm0, %v62_v12 }
  0x93   :  { %77 = vst.msk [vmem:[%s147_s3] sm:$0xff] %vm19_vm0, %v75_v14 }
  0x98   :  { %v70_v15 = vld [vmem:[#allocation2 + $0x8] sm:$0xff] }
  0x99   :  { %v76_v16 = vadd.f32 %v95_v10, %v70_v15 }
  0x9b   :  { %78 = vst.msk [vmem:[%s147_s3 + $0x8] sm:$0xff] %vm19_vm0, %v76_v16 }

// kernel: language_model_forward.12
= control target key start
LH: loop header
LB: loop body
LE: loop exit
PB: predicated region body
PF: predicated region fallthrough
CT: control target
= control target key end

     0   :  { %vm16_vm0 = vcmask 261120   ;;  %v95_v4 = vmov 32.0   ;;  %s140_s0 = inlined_call_operand.vmem [shape: f32[16,32], index: 0, kind: input, shape index: {}]   ;;  %s141_s1 = inlined_call_operand.vmem [shape: f32[1,32], index: 1, kind: input, shape index: {}]   ;;  %s142_s2 = inlined_call_operand.vmem [shape: f32[1,32], index: 2, kind: input, shape index: {}]   ;;  %s143_s3 = inlined_call_operand.vmem [shape: f32[16,32], index: 3, kind: output, shape index: {}]  }
   0x1   :  { %v14_v0 = vld [vmem:[%s140_s0] sm:$0xff]  ;;  %v15_v2 = vld [vmem:[%s140_s0 + $0x8] sm:$0xff]  ;;  %89 = vrcp.f32 %v95_v4 }
   0x2   :  { %v17_v1 = vsel %vm16_vm0, %v14_v0, 0.0  ;;  %v20_v3 = vsel %vm16_vm0, %v15_v2, 0.0  ;;  %v87_v35 = vld [vmem:[%s141_s1] ss:$0 sm:$0xff] }
   0x3   :  { %18 = vadd.xlane.f32.xlu0 %v17_v1  ;;  %v88_v38 = vld [vmem:[%s142_s2] ss:$0 sm:$0xff] }
   0x7   :  { %v90_v5 = vpop.eup %89 }
   0x8   :  { %v24_v6 = vmul.f32 32.0, %v90_v5  ;;  %vm28_vm1 = vweird.f32 %v90_v5 }
   0xa   :  { %v25_v7 = vsub.f32 1.0, %v24_v6 }
   0xb   :  { %21 = vadd.xlane.f32.xlu0 %v20_v3 }
   0xc   :  { %v26_v8 = vmul.f32 %v90_v5, %v25_v7 }
   0xe   :  { %v27_v9 = vadd.f32 %v90_v5, %v26_v8 }
  0x10   :  { %v29_v10 = vsel %vm28_vm1, %v90_v5, %v27_v9 }
  0x76   :  { %v19_v11 = vpop.xlane.xlu0 %18 }
  0x77   :  { %v30_v12 = vmul.f32 %v29_v10, %v19_v11 }
  0x79   :  { %v32_v13 = vsub.f32 %v14_v0, %v30_v12 }
  0x7b   :  { %v34_v14 = vmul.f32 %v32_v13, %v32_v13 }
  0x7d   :  { %v36_v15 = vsel %vm16_vm0, %v34_v14, 0.0 }
  0x7e   :  { %37 = vadd.xlane.f32.xlu1 %v36_v15  ;;  %v22_v16 = vpop.xlane.xlu0 %21 }
  0x7f   :  { %v31_v17 = vmul.f32 %v29_v10, %v22_v16 }
  0x81   :  { %v33_v18 = vsub.f32 %v15_v2, %v31_v17 }
  0x83   :  { %v35_v19 = vmul.f32 %v33_v18, %v33_v18 }
  0x85   :  { %v39_v20 = vsel %vm16_vm0, %v35_v19, 0.0 }
  0x86   :  { %40 = vadd.xlane.f32.xlu1 %v39_v20 }
  0xf1   :  { %v38_v21 = vpop.xlane.xlu1 %37 }
  0xf2   :  { %v42_v22 = vmul.f32 %v38_v21, %v29_v10 }
  0xf4   :  { %v44_v23 = vadd.f32 1e-12, %v42_v22 }
  0xf6   :  { %91 = vrsqrt.f32 %v44_v23  ;;  %vm52_vm3 = vweird.f32 %v44_v23 }
  0xf9   :  { %v41_v24 = vpop.xlane.xlu1 %40 }
  0xfa   :  { %v43_v25 = vmul.f32 %v41_v24, %v29_v10 }
  0xfc   :  { %v92_v26 = vpop.eup %91  ;;  %v45_v27 = vadd.f32 1e-12, %v43_v25 }
  0xfd   :  { %v47_v28 = vmul.f32 %v92_v26, %v44_v23  ;;  %vm53_vm2 = vweird.f32 %v92_v26 }
  0xfe   :  { %93 = vrsqrt.f32 %v45_v27  ;;  %vm54_vm4 = vmor %vm52_vm3, %vm53_vm2  ;;  %vm62_vm6 = vweird.f32 %v45_v27 }
  0xff   :  { %v48_v29 = vmul.f32 %v92_v26, %v47_v28 }
 0x101   :  { %v49_v30 = vmul.f32 0.5, %v48_v29 }
 0x103   :  { %v50_v31 = vsub.f32 1.5, %v49_v30 }
 0x104   :  { %v94_v32 = vpop.eup %93 }
 0x105   :  { %v51_v33 = vmul.f32 %v92_v26, %v50_v31  ;;  %v57_v34 = vmul.f32 %v94_v32, %v45_v27  ;;  %vm63_vm5 = vweird.f32 %v94_v32 }
 0x106   :  { %vm64_vm7 = vmor %vm62_vm6, %vm63_vm5 }
 0x107   :  { %v55_v36 = vsel %vm54_vm4, %v92_v26, %v51_v33  ;;  %v58_v37 = vmul.f32 %v94_v32, %v57_v34 }
 0x108   :  { %v66_v39 = vmul.f32 %v55_v36, %v32_v13 }
 0x109   :  { %v59_v40 = vmul.f32 0.5, %v58_v37 }
 0x10a   :  { %v72_v41 = vmul.f32 %v87_v35, %v66_v39 }
 0x10b   :  { %v60_v42 = vsub.f32 1.5, %v59_v40 }
 0x10c   :  { %v78_v43 = vadd.f32 %v88_v38, %v72_v41 }
 0x10d   :  { %v61_v44 = vmul.f32 %v94_v32, %v60_v42 }
 0x10e   :  { %80 = vst.msk [vmem:[%s143_s3] sm:$0xff] %vm16_vm0, %v78_v43 }
 0x10f   :  { %v65_v45 = vsel %vm64_vm7, %v94_v32, %v61_v44 }
 0x110   :  { %v67_v46 = vmul.f32 %v65_v45, %v33_v18 }
 0x112   :  { %v73_v47 = vmul.f32 %v87_v35, %v67_v46 }
 0x114   :  { %v79_v48 = vadd.f32 %v88_v38, %v73_v47 }
 0x116   :  { %81 = vst.msk [vmem:[%s143_s3 + $0x8] sm:$0xff] %vm16_vm0, %v79_v48 }

// kernel: language_model_forward.15
= control target key start
LH: loop header
LB: loop body
LE: loop exit
PB: predicated region body
PF: predicated region fallthrough
CT: control target
= control target key end

     0   :  { %vm28_vm0 = vcmask 261120   ;;  %v180_v1 = vmov 0.0   ;;  %v181_v23 = vmov 32.0   ;;  %s261_s1 = inlined_call_operand.vmem [shape: bf16[32,32], index: 1, kind: input, shape index: {}]   ;;  %s262_s0 = inlined_call_operand.vmem [shape: f32[16,32], index: 0, kind: input, shape index: {}]   ;;  %s263_s2 = inlined_call_operand.vmem [shape: f32[1,32], index: 2, kind: input, shape index: {}]   ;;  %s264_s3 = inlined_call_operand.vmem [shape: f32[16,32], index: 3, kind: input, shape index: {}]   ;;  %s265_s4 = inlined_call_operand.vmem [shape: f32[1,32], index: 4, kind: input, shape index: {}]   ;;  %s266_s5 = inlined_call_operand.vmem [shape: f32[1,32], index: 5, kind: input, shape index: {}]   ;;  %s267_s6 = inlined_call_operand.vmem [shape: f32[16,32], index: 6, kind: output, shape index: {}]  }
   0x1   :  { %v168_v0 = vld [vmem:[%s261_s1 + $0x8] sm:$0xff]  ;;  %29 = vst.msk [vmem:[#allocation2] sm:$0xff] %vm28_vm0, %v180_v1  ;;  %v167_v2 = vld [vmem:[%s261_s1] sm:$0xff]  ;;  %174 = vrcp.f32 %v181_v23 }
   0x2   :  { %30 = vst.msk [vmem:[#allocation2 + $0x8] sm:$0xff] %vm28_vm0, %v180_v1  ;;  %62 = vmatpush.bf16.msra.mxu0 %v168_v0  ;;  %v33_v3 = vld [vmem:[%s262_s0] sm:$0xff]  ;;  %v34_v4 = vld [vmem:[%s262_s0 + $0x8] sm:$0xff] }
   0x3   :  { %v35_v5 = vpack.c.bf16 %v34_v4, %v33_v3  ;;  %v171_v10 = vld [vmem:[%s263_s2] ss:$0 sm:$0xff]  ;;  %v86_v19 = vld [vmem:[%s264_s3 + $0x8] sm:$0xff] }
   0x4   :  { %v85_v14 = vld [vmem:[%s264_s3] sm:$0xff] }
   0x5   :  { %v172_v54 = vld [vmem:[%s265_s4] ss:$0 sm:$0xff] }
   0x6   :  { %63 = vmatpush.bf16.msra.mxu0 %v167_v2  ;;  %v173_v57 = vld [vmem:[%s266_s5] ss:$0 sm:$0xff] }
   0x7   :  { %v175_v24 = vpop.eup %174 }
   0x8   :  { %v31_v6 = vld [vmem:[#allocation2] sm:$0xff]  ;;  %v96_v25 = vmul.f32 32.0, %v175_v24  ;;  %vm100_vm1 = vweird.f32 %v175_v24 }
   0x9   :  { %166 = vmatmul.msk.bf16.vlgmr.msra.gmra.mxu0 %vm28_vm0, %v35_v5  ;;  %v32_v9 = vld [vmem:[#allocation2 + $0x8] sm:$0xff] }
   0xa   :  { %v97_v26 = vsub.f32 1.0, %v96_v25 }
   0xc   :  { %v98_v27 = vmul.f32 %v175_v24, %v97_v26 }
   0xe   :  { %v99_v28 = vadd.f32 %v175_v24, %v98_v27 }
  0x10   :  { %v101_v29 = vsel %vm100_vm1, %v175_v24, %v99_v28 }
  0x86   :  { %v65_v7 = vpop.f32.mrf.mxu0 }
  0x87   :  { %v70_v8 = vadd.f32 %v65_v7, %v31_v6 }
  0x89   :  { %72 = vst.msk [vmem:[#allocation2] sm:$0xff] %vm28_vm0, %v70_v8 }
  0x8e   :  { %v67_v11 = vpop.f32.mrf.mxu0 }
  0x8f   :  { %v71_v12 = vadd.f32 %v67_v11, %v32_v9 }
  0x90   :  { %v77_v13 = vld [vmem:[#allocation2] sm:$0xff] }
  0x91   :  { %73 = vst.msk [vmem:[#allocation2 + $0x8] sm:$0xff] %vm28_vm0, %v71_v12  ;;  %v83_v15 = vadd.f32 %v171_v10, %v77_v13 }
  0x93   :  { %v87_v16 = vadd.f32 %v85_v14, %v83_v15 }
  0x95   :  { %v89_v17 = vsel %vm28_vm0, %v87_v16, 0.0 }
  0x96   :  { %90 = vadd.xlane.f32.xlu0 %v89_v17 }
  0x98   :  { %v78_v18 = vld [vmem:[#allocation2 + $0x8] sm:$0xff] }
  0x99   :  { %v84_v20 = vadd.f32 %v171_v10, %v78_v18 }
  0x9b   :  { %v88_v21 = vadd.f32 %v86_v19, %v84_v20 }
  0x9d   :  { %v92_v22 = vsel %vm28_vm0, %v88_v21, 0.0 }
  0x9e   :  { %93 = vadd.xlane.f32.xlu0 %v92_v22 }
 0x109   :  { %v91_v30 = vpop.xlane.xlu0 %90 }
 0x10a   :  { %v102_v31 = vmul.f32 %v101_v29, %v91_v30 }
 0x10c   :  { %v104_v32 = vsub.f32 %v87_v16, %v102_v31 }
 0x10e   :  { %v106_v33 = vmul.f32 %v104_v32, %v104_v32 }
 0x110   :  { %v108_v34 = vsel %vm28_vm0, %v106_v33, 0.0 }
 0x111   :  { %109 = vadd.xlane.f32.xlu1 %v108_v34  ;;  %v94_v35 = vpop.xlane.xlu0 %93 }
 0x112   :  { %v103_v36 = vmul.f32 %v101_v29, %v94_v35 }
 0x114   :  { %v105_v37 = vsub.f32 %v88_v21, %v103_v36 }
 0x116   :  { %v107_v38 = vmul.f32 %v105_v37, %v105_v37 }
 0x118   :  { %v111_v39 = vsel %vm28_vm0, %v107_v38, 0.0 }
 0x119   :  { %112 = vadd.xlane.f32.xlu1 %v111_v39 }
 0x184   :  { %v110_v40 = vpop.xlane.xlu1 %109 }
 0x185   :  { %v114_v41 = vmul.f32 %v110_v40, %v101_v29 }
 0x187   :  { %v116_v42 = vadd.f32 1e-12, %v114_v41 }
 0x189   :  { %176 = vrsqrt.f32 %v116_v42  ;;  %vm124_vm3 = vweird.f32 %v116_v42 }
 0x18c   :  { %v113_v43 = vpop.xlane.xlu1 %112 }
 0x18d   :  { %v115_v44 = vmul.f32 %v113_v43, %v101_v29 }
 0x18f   :  { %v177_v45 = vpop.eup %176  ;;  %v117_v46 = vadd.f32 1e-12, %v115_v44 }
 0x190   :  { %v119_v47 = vmul.f32 %v177_v45, %v116_v42  ;;  %vm125_vm2 = vweird.f32 %v177_v45 }
 0x191   :  { %178 = vrsqrt.f32 %v117_v46  ;;  %vm126_vm4 = vmor %vm124_vm3, %vm125_vm2  ;;  %vm134_vm6 = vweird.f32 %v117_v46 }
 0x192   :  { %v120_v48 = vmul.f32 %v177_v45, %v119_v47 }
 0x194   :  { %v121_v49 = vmul.f32 0.5, %v120_v48 }
 0x196   :  { %v122_v50 = vsub.f32 1.5, %v121_v49 }
 0x197   :  { %v179_v51 = vpop.eup %178 }
 0x198   :  { %v123_v52 = vmul.f32 %v177_v45, %v122_v50  ;;  %v129_v53 = vmul.f32 %v179_v51, %v117_v46  ;;  %vm135_vm5 = vweird.f32 %v179_v51 }
 0x199   :  { %vm136_vm7 = vmor %vm134_vm6, %vm135_vm5 }
 0x19a   :  { %v127_v55 = vsel %vm126_vm4, %v177_v45, %v123_v52  ;;  %v130_v56 = vmul.f32 %v179_v51, %v129_v53 }
 0x19b   :  { %v138_v58 = vmul.f32 %v127_v55, %v104_v32 }
 0x19c   :  { %v131_v59 = vmul.f32 0.5, %v130_v56 }
 0x19d   :  { %v144_v60 = vmul.f32 %v172_v54, %v138_v58 }
 0x19e   :  { %v132_v61 = vsub.f32 1.5, %v131_v59 }
 0x19f   :  { %v150_v62 = vadd.f32 %v173_v57, %v144_v60 }
 0x1a0   :  { %v133_v63 = vmul.f32 %v179_v51, %v132_v61 }
 0x1a1   :  { %152 = vst.msk [vmem:[%s267_s6] sm:$0xff] %vm28_vm0, %v150_v62 }
 0x1a2   :  { %v137_v0 = vsel %vm136_vm7, %v179_v51, %v133_v63 }
 0x1a3   :  { %v139_v1 = vmul.f32 %v137_v0, %v105_v37 }
 0x1a5   :  { %v145_v2 = vmul.f32 %v172_v54, %v139_v1 }
 0x1a7   :  { %v151_v3 = vadd.f32 %v173_v57, %v145_v2 }
 0x1a9   :  { %153 = vst.msk [vmem:[%s267_s6 + $0x8] sm:$0xff] %vm28_vm0, %v151_v3 }

// kernel: language_model_forward.14
= control target key start
LH: loop header
LB: loop body
LE: loop exit
PB: predicated region body
PF: predicated region fallthrough
CT: control target
= control target key end

     0   :  { %s705_s12 = smov 0   ;;  %s707_s13 = smov 0   ;;  %s778_s0 = inlined_call_operand.vmem [shape: f32[2,8,32], index: 0, kind: input, shape index: {}]   ;;  %s779_s1 = inlined_call_operand.vmem [shape: f32[2,8,32], index: 1, kind: input, shape index: {}]   ;;  %s780_s2 = inlined_call_operand.vmem [shape: f32[2,8,32], index: 2, kind: input, shape index: {}]   ;;  %s781_s3 = inlined_call_operand.vmem [shape: f32[2,8,32], index: 3, kind: output, shape index: {}]  }
   0x1   :  { %s709_s14 = smov 0  }
   0x2 LB: > { %s32_s15 = sadd.s32 1, %s673_s13  ;;  %p600_p0 = scmp.ge.s32.totalorder %s677_s14, 1  ;;  %s677_s14 = sphi %s709_s14, %s13_s14   ;;  %s673_s13 = sphi %s707_s13, %s783_s13   ;;  %s669_s12 = sphi %s705_s12, %s782_s12  }
   0x3   : > { %p34_p1 = scmp.ge.s32.totalorder %s32_s15, 2  ;;  %p190_p2 = scmp.lt.s32.totalorder %s677_s14, 3 }
   0x5   : > { %s785_s15 = smov (%p34_p1, %s32_s15), 0  ;;  %p191_p3 = pnand %p600_p0, %p190_p2 }
   0x6   : > { %p232_p4 = scmp.lt.s32.totalorder (!%p191_p3), %s669_s12, 1  ;;  %s679_s23 = smov (!%p191_p3), 112  }
   0x7   : > { %194 = sbr.rel (%p191_p3) target bundleno = 894 (0x37e), region = 32  ;;  %s684_s27 = smov (!%p191_p3), 16  }
   0xc   : > { %s787_s12 = smov (!%p232_p4, %s669_s12), 1  ;;  %vm270_vm0 = vcmask 130048   ;;  %vm265_vm1 = vcmask 7168   ;;  %v680_v9 = vmov -inf   ;;  %v281_v12 = vlaneseq }
   0xd   : > { %s723_s16 = sshll.u32 %s787_s12, 3  ;;  %266 = vst.msk [vmem:[#allocation2] sm:$0xff] %vm265_vm1, %v680_v9  ;;  %v681_v17 = vmov -1e+09   ;;  %vm314_vm3 = vcmask 64512   ;;  %v682_v23 = vmov 0  }
   0xe   : > { %s245_s19 = scalar_lea.vmem %s779_s1, %s723_s16  ;;  %s238_s22 = scalar_lea.vmem %s778_s0, %s723_s16  ;;  %267 = vst.msk [vmem:[#allocation2 + $0x8] sm:$0xff] %vm265_vm1, %v680_v9  ;;  %v282_v14 = vshrl.u32 %v281_v12, 7  ;;  %v286_v15 = vand.u32 127, %v281_v12  ;;  %642 = vset.pattern.permute.xlu0 %v682_v23  ;;  %641 = vset.pattern.permute.xlu1 %v682_v23  ;;  %vm349_vm4 = vcmask 1043456   ;;  %v683_v38 = vmov 0.0  }
   0xf   : > { %v275_v0 = vld [vmem:[%s245_s19] sm:$0xff]  ;;  %s252_s26 = scalar_lea.vmem %s780_s2, %s723_s16  ;;  %268 = vst.msk [vmem:[#allocation3] sm:$0xff] %vm265_vm1, %v683_v38  ;;  %s259_s30 = scalar_lea.vmem %s781_s3, %s723_s16  ;;  %vm487_vm5 = vcmask 261120  }
  0x10   : > { %v273_v1 = vld [vmem:[%s238_s22] sm:$0xff]  ;;  %v276_v2 = vpack.c.bf16 %v275_v0, %v275_v0  ;;  %vm289_vm2 = vcmp.ge.s32.totalorder %v282_v14, %v286_v15  ;;  %272 = vst.msk [vmem:[#allocation4 + $0x8] sm:$0xff] %vm270_vm0, %v683_v38 }
  0x11   : > { %v274_v5 = vpack.c.bf16 %v273_v1, %v273_v1  ;;  %v290_v18 = vsel %vm289_vm2, 0.0, %v681_v17  ;;  %v277_v24 = vld [vmem:[%s252_s26] sm:$0xff]  ;;  %269 = vst.msk [vmem:[#allocation3 + $0x8] sm:$0xff] %vm265_vm1, %v683_v38 }
  0x12   : > { %v296_v3 = vsel %vm270_vm0, %v276_v2, 0  ;;  %v375_v4 = vunpack.c.l.b16 %v276_v2  ;;  %v278_v25 = vpack.c.bf16 %v277_v24, %v277_v24  ;;  %271 = vst.msk [vmem:[#allocation4] sm:$0xff] %vm270_vm0, %v683_v38 }
  0x13   : > { %305 = vmatpush.bf16.xpose.msra.mxu0 %v296_v3  ;;  %v370_v7 = vunpack.c.l.b16 %v274_v5 }
  0x14   : > { %v376_v6 = vpack.c.b16 %v375_v4, %v375_v4  ;;  %v435_v26 = vunpack.c.l.b16 %v278_v25  ;;  %v313_v28 = vld [vmem:[#allocation2] sm:$0xff]  ;;  %v351_v37 = vsel %vm349_vm4, %v278_v25, 0 }
  0x15   : > { %v371_v8 = vpack.c.b16 %v370_v7, %v370_v7  ;;  %360 = vmatpush.bf16.msra.mxu1 %v351_v37  ;;  %v401_v42 = vld [vmem:[#allocation2 + $0x8] sm:$0xff] }
  0x16   : > { %377 = vrot.lane.b32.xlu0 %v376_v6, %s679_s23  ;;  %v436_v27 = vpack.c.b16 %v435_v26, %v435_v26  ;;  %v330_v55 = vld [vmem:[#allocation3] sm:$0xff] }
  0x18   : > { %v418_v3 = vld [vmem:[#allocation3 + $0x8] sm:$0xff] }
  0x1a   : > { %605 = vmatmul.msk.bf16.vlgmr.msra.gmra.mxu0 %vm270_vm0, %v274_v5 }
  0x1e   : > { %372 = vrot.lane.b32.xlu0 %v371_v8, %s679_s23  ;;  %v426_v8 = vld [vmem:[#allocation4 + $0x8] sm:$0xff] }
  0x88   : > { %v378_v10 = vpop.permute.xlu0 %377 }
  0x89   : > { %v383_v11 = vsel %vm270_vm0, %v378_v10, 0 }
  0x8a   : > { %392 = vmatpush.bf16.xpose.msra.mxu2 %v383_v11 }
  0x90   : > { %v373_v13 = vpop.permute.xlu0 %372 }
  0x91   : > { %607 = vmatmul.msk.bf16.vlgmr.msra.gmra.mxu2 %vm270_vm0, %v373_v13 }
  0x97   : > { %v307_v16 = vpop.f32.mrf.mxu0 }
  0x98   : > { %v311_v19 = vmul.f32 0.25, %v307_v16 }
  0x9a   : > { %v312_v20 = vadd.f32 %v311_v19, %v290_v18 }
  0x9c   : > { %v315_v21 = vsel %vm314_vm3, %v312_v20, -inf }
  0x9d   : > { %316 = vmax.xlane.f32.xlu2 %v315_v21 }
  0x9f   : > { %v309_v22 = vpop.f32.mrf.mxu0 }
  0xb5   : > { %437 = vrot.lane.b32.xlu2 %v436_v27, %s679_s23 }
 0x110   : > { %v317_v29 = vpop.xlane.xlu2 %316 }
 0x111   : > { %v318_v30 = vmax.f32 %v313_v28, %v317_v29 }
 0x113   : > { %v319_v31 = vsub.f32 %v313_v28, %v318_v30  ;;  %368 = vst.msk [vmem:[#allocation2] sm:$0xff] %vm265_vm1, %v318_v30  ;;  %324 = vperm.xlu0 %642, %v318_v30  }
 0x114   : > { %v394_v32 = vpop.f32.mrf.mxu2 }
 0x115   : > { %v398_v33 = vmul.f32 0.25, %v394_v32  ;;  %v320_v53 = vmul.f32 1.442695, %v319_v31 }
 0x117   : > { %v399_v34 = vadd.f32 %v398_v33, %v290_v18 }
 0x118   : > { %v438_v51 = vpop.permute.xlu2 %437 }
 0x119   : > { %v402_v35 = vsel %vm314_vm3, %v399_v34, -inf  ;;  %v443_v52 = vsel %vm349_vm4, %v438_v51, 0 }
 0x11a   : > { %403 = vmax.xlane.f32.xlu1 %v402_v35  ;;  %452 = vmatpush.bf16.msra.mxu3 %v443_v52 }
 0x11c   : > { %v396_v36 = vpop.f32.mrf.mxu2 }
 0x185   : > { %v325_v39 = vpop.permute.xlu0 %324 }
 0x186   : > { %v327_v40 = vsub.f32 %v312_v20, %v325_v39  ;;  %v338_v20 = vld [vmem:[#allocation4] sm:$0xff] }
 0x188   : > { %v328_v41 = vmul.f32 1.442695, %v327_v40 }
 0x18a   : > { %643 = vpow2.f32 %v328_v41 }
 0x18d   : > { %v404_v43 = vpop.xlane.xlu1 %403 }
 0x18e   : > { %v405_v44 = vmax.f32 %v401_v42, %v404_v43 }
 0x190   : > { %v644_v45 = vpop.eup %643  ;;  %v406_v46 = vsub.f32 %v401_v42, %v405_v44  ;;  %460 = vst.msk [vmem:[#allocation2 + $0x8] sm:$0xff] %vm265_vm1, %v405_v44  ;;  %411 = vperm.xlu1 %641, %v405_v44  }
 0x191   : > { %v332_v47 = vsel %vm314_vm3, %v644_v45, 0.0  ;;  %v345_v48 = vpack.c.bf16 %v644_v45, %v644_v45 }
 0x192   : > { %v407_v49 = vmul.f32 1.442695, %v406_v46  ;;  %333 = vadd.xlane.f32.xlu2 %v332_v47 }
 0x193   : > { %606 = vmatmul.msk.bf16.vlgmr.msra.gmra.mxu1 %vm314_vm3, %v345_v48 }
 0x194   : > { %645 = vpow2.f32 %v407_v49 }
 0x195   : > { %647 = vpow2.f32 %v320_v53 }
 0x19a   : > { %v646_v50 = vpop.eup %645 }
 0x19b   : > { %429 = vperm.xlu1 %641, %v646_v50   ;;  %v648_v54 = vpop.eup %647  ;;  %v419_v4 = vmul.f32 %v646_v50, %v418_v3 }
 0x19c   : > { %v331_v58 = vmul.f32 %v648_v54, %v330_v55 }
 0x202   : > { %v412_v56 = vpop.permute.xlu1 %411 }
 0x203   : > { %v414_v57 = vsub.f32 %v399_v34, %v412_v56 }
 0x205   : > { %v415_v59 = vmul.f32 1.442695, %v414_v57  ;;  %v334_v60 = vpop.xlane.xlu2 %333 }
 0x206   : > { %v335_v61 = vadd.f32 %v334_v60, %v331_v58 }
 0x207   : > { %649 = vpow2.f32 %v415_v59 }
 0x208   : > { %337 = vst.msk [vmem:[#allocation3] sm:$0xff] %vm265_vm1, %v335_v61 }
 0x20d   : > { %v650_v62 = vpop.eup %649  ;;  %v430_v9 = vpop.permute.xlu1 %429 }
 0x20e   : > { %v420_v63 = vsel %vm314_vm3, %v650_v62, 0.0  ;;  %v433_v0 = vpack.c.bf16 %v650_v62, %v650_v62  ;;  %v432_v10 = vmul.f32 %v430_v9, %v426_v8 }
 0x20f   : > { %421 = vadd.xlane.f32.xlu0 %v420_v63  ;;  %v465_v14 = vld [vmem:[#allocation3] sm:$0xff] }
 0x210   : > { %v362_v1 = vpop.f32.mrf.mxu1  ;;  %608 = vmatmul.msk.bf16.vlgmr.msra.gmra.mxu3 %vm314_vm3, %v433_v0 }
 0x218   : > { %v364_v2 = vpop.f32.mrf.mxu1 }
 0x282   : > { %v422_v5 = vpop.xlane.xlu0 %421 }
 0x283   : > { %v423_v6 = vadd.f32 %v422_v5, %v419_v4 }
 0x285   : > { %424 = vst.msk [vmem:[#allocation3 + $0x8] sm:$0xff] %vm265_vm1, %v423_v6 }
 0x28c   : > { %v474_v7 = vld [vmem:[#allocation3 + $0x8] sm:$0xff] }
 0x28d   : > { %651 = vrcp.f32 %v474_v7 }
 0x28e   : > { %653 = vrcp.f32 %v465_v14 }
 0x293   : > { %v652_v11 = vpop.eup %651  ;;  %v454_v12 = vpop.f32.mrf.mxu3 }
 0x294   : > { %v458_v13 = vadd.f32 %v454_v12, %v432_v10  ;;  %478 = vperm.xlu1 %641, %v652_v11   ;;  %v654_v16 = vpop.eup %653 }
 0x296   : > { %459 = vst.msk [vmem:[#allocation4 + $0x8] sm:$0xff] %vm270_vm0, %v458_v13 }
 0x29b   : > { %v456_v15 = vpop.f32.mrf.mxu3 }
 0x29c   : > { %341 = vperm.xlu1 %641, %v648_v54  }
 0x29d   : > { %v473_v18 = vld [vmem:[#allocation4 + $0x8] sm:$0xff] }
 0x2a4   : > { %469 = vperm.xlu1 %641, %v654_v16  }
 0x306   : > { %v479_v17 = vpop.permute.xlu1 %478 }
 0x307   : > { %v481_v19 = vmul.f32 %v479_v17, %v473_v18 }
 0x309   : > { %483 = vrot.lane.b32.xlu1 %v481_v19, %s684_s27 }
 0x30e   : > { %v342_v21 = vpop.permute.xlu1 %341 }
 0x30f   : > { %v344_v22 = vmul.f32 %v342_v21, %v338_v20 }
 0x311   : > { %v366_v23 = vadd.f32 %v362_v1, %v344_v22 }
 0x313   : > { %367 = vst.msk [vmem:[#allocation4] sm:$0xff] %vm270_vm0, %v366_v23 }
 0x316   : > { %v470_v24 = vpop.permute.xlu1 %469 }
 0x31a   : > { %v464_v25 = vld [vmem:[#allocation4] sm:$0xff] }
 0x31b   : > { %v472_v26 = vmul.f32 %v470_v24, %v464_v25 }
 0x37b   : > { %v484_v27 = vpop.permute.xlu1 %483 }
 0x37c   : > { %v486_v28 = vsel %vm270_vm0, %v472_v26, %v484_v27 }
 0x37d   : > { %488 = vst.msk [vmem:[%s259_s30] sm:$0xff] %vm487_vm5, %v486_v28 }
 0x37e PF: > { %s13_s14 = sadd.s32 1, %s677_s14   ;;  %s782_s12 = smov %s673_s13 }
 0x37f   : > { %p10_p5 = scmp.ge.s32.totalorder %s13_s14, 4   ;;  %s783_s13 = smov %s785_s15 }
 0x381   :  { %12 = sbr.rel (!%p10_p5) target bundleno = 2 (0x2), region = 79 }

// kernel: language_model_forward.16
= control target key start
LH: loop header
LB: loop body
LE: loop exit
PB: predicated region body
PF: predicated region fallthrough
CT: control target
= control target key end

     0   :  { %vm19_vm0 = vcmask 523264   ;;  %v118_v1 = vmov 0.0   ;;  %vm43_vm1 = vcmask 261120   ;;  %s166_s1 = inlined_call_operand.vmem [shape: bf16[32,64], index: 1, kind: input, shape index: {}]   ;;  %s167_s0 = inlined_call_operand.vmem [shape: f32[16,32], index: 0, kind: input, shape index: {}]   ;;  %s168_s2 = inlined_call_operand.vmem [shape: f32[1,64], index: 2, kind: input, shape index: {}]   ;;  %s169_s3 = inlined_call_operand.vmem [shape: f32[16,64], index: 3, kind: output, shape index: {}]  }
   0x1   :  { %v111_v0 = vld [vmem:[%s166_s1 + $0x8] sm:$0xff]  ;;  %20 = vst.msk [vmem:[#allocation2] sm:$0xff] %vm19_vm0, %v118_v1  ;;  %v110_v2 = vld [vmem:[%s166_s1] sm:$0xff] }
   0x2   :  { %21 = vst.msk [vmem:[#allocation2 + $0x8] sm:$0xff] %vm19_vm0, %v118_v1  ;;  %53 = vmatpush.bf16.msra.mxu0 %v111_v0  ;;  %v24_v3 = vld [vmem:[%s167_s0] sm:$0xff]  ;;  %v25_v4 = vld [vmem:[%s167_s0 + $0x8] sm:$0xff] }
   0x3   :  { %v26_v5 = vpack.c.bf16 %v25_v4, %v24_v3  ;;  %v113_v10 = vld [vmem:[%s168_s2] ss:$0 sm:$0xff] }
   0x6   :  { %54 = vmatpush.bf16.msra.mxu0 %v110_v2 }
   0x8   :  { %v22_v6 = vld [vmem:[#allocation2] sm:$0xff] }
   0x9   :  { %109 = vmatmul.msk.bf16.vlgmr.msra.gmra.mxu0 %vm43_vm1, %v26_v5  ;;  %v23_v9 = vld [vmem:[#allocation2 + $0x8] sm:$0xff] }
  0x86   :  { %v56_v7 = vpop.f32.mrf.mxu0 }
  0x87   :  { %v61_v8 = vadd.f32 %v56_v7, %v22_v6 }
  0x89   :  { %64 = vst.msk [vmem:[#allocation2] sm:$0xff] %vm19_vm0, %v61_v8 }
  0x8e   :  { %v58_v11 = vpop.f32.mrf.mxu0 }
  0x8f   :  { %v62_v12 = vadd.f32 %v58_v11, %v23_v9 }
  0x90   :  { %v69_v13 = vld [vmem:[#allocation2] sm:$0xff] }
  0x91   :  { %v75_v14 = vadd.f32 %v113_v10, %v69_v13  ;;  %65 = vst.msk [vmem:[#allocation2 + $0x8] sm:$0xff] %vm19_vm0, %v62_v12 }
  0x93   :  { %v77_v15 = vmul.f32 %v75_v14, %v75_v14 }
  0x95   :  { %v79_v16 = vmul.f32 %v77_v15, %v75_v14 }
  0x97   :  { %v81_v17 = vmul.f32 0.044715, %v79_v16 }
  0x98   :  { %v70_v18 = vld [vmem:[#allocation2 + $0x8] sm:$0xff] }
  0x99   :  { %v83_v19 = vadd.f32 %v81_v17, %v75_v14  ;;  %v76_v20 = vadd.f32 %v113_v10, %v70_v18 }
  0x9b   :  { %v85_v21 = vmul.f32 0.7978846, %v83_v19  ;;  %v78_v22 = vmul.f32 %v76_v20, %v76_v20 }
  0x9d   :  { %114 = vtanh.f32 %v85_v21  ;;  %v80_v23 = vmul.f32 %v78_v22, %v76_v20 }
  0x9f   :  { %v82_v24 = vmul.f32 0.044715, %v80_v23 }
  0xa1   :  { %v84_v25 = vadd.f32 %v82_v24, %v76_v20 }
  0xa3   :  { %v115_v26 = vpop.eup %114  ;;  %v86_v27 = vmul.f32 0.7978846, %v84_v25 }
  0xa4   :  { %v89_v28 = vadd.f32 1.0, %v115_v26 }
  0xa5   :  { %116 = vtanh.f32 %v86_v27 }
  0xa6   :  { %v91_v29 = vmul.f32 0.5, %v89_v28 }
  0xa8   :  { %v93_v30 = vmul.f32 %v91_v29, %v75_v14 }
  0xaa   :  { %95 = vst.msk [vmem:[%s169_s3] sm:$0xff] %vm19_vm0, %v93_v30 }
  0xab   :  { %v117_v31 = vpop.eup %116 }
  0xac   :  { %v90_v32 = vadd.f32 1.0, %v117_v31 }
  0xae   :  { %v92_v33 = vmul.f32 0.5, %v90_v32 }
  0xb0   :  { %v94_v34 = vmul.f32 %v92_v33, %v76_v20 }
  0xb2   :  { %96 = vst.msk [vmem:[%s169_s3 + $0x8] sm:$0xff] %vm19_vm0, %v94_v34 }

// kernel: language_model_forward.23
= control target key start
LH: loop header
LB: loop body
LE: loop exit
PB: predicated region body
PF: predicated region fallthrough
CT: control target
= control target key end

     0   :  { %v202_v1 = vmov 0   ;;  %vm52_vm0 = vcmask 261120   ;;  %vm22_vm1 = vcmask 7168   ;;  %v203_v8 = vmov -inf   ;;  %s277_s1 = inlined_call_operand.vmem [shape: bf16[32,64], index: 1, kind: input, shape index: {}]   ;;  %s278_s0 = inlined_call_operand.vmem [shape: f32[16,32], index: 0, kind: input, shape index: {}]   ;;  %s279_s3 = inlined_call_operand.vmem [shape: s32[16,1], index: 3, kind: input, shape index: {}]   ;;  %s280_s2 = inlined_call_operand.vmem [shape: f32[1,64], index: 2, kind: input, shape index: {}]   ;;  %s281_s4 = inlined_call_operand.vmem [shape: f32[16,1], index: 4, kind: output, shape index: {}]  }
   0x1   :  { %v182_v0 = vld [vmem:[%s277_s1 + $0x8] sm:$0xff]  ;;  %187 = vset.pattern.permute.xlu2 %v202_v1  ;;  %186 = vset.pattern.permute.xlu1 %v202_v1  ;;  %v181_v2 = vld [vmem:[%s277_s1] sm:$0xff]  ;;  %23 = vst.msk [vmem:[#allocation2] sm:$0xff] %vm22_vm1, %v203_v8  ;;  %v70_v9 = vlaneseq  ;;  %vm89_vm3 = vcmask 523264   ;;  %v204_v21 = vmov 0.0  }
   0x2   :  { %v75_v3 = vld [vmem:[%s279_s3] sm:$0xff]  ;;  %188 = vset.pattern.permute.xlu0 %v202_v1  ;;  %62 = vmatpush.bf16.msra.mxu0 %v182_v0  ;;  %v30_v5 = vld [vmem:[%s278_s0 + $0x8] sm:$0xff]  ;;  %24 = vst.msk [vmem:[#allocation2 + $0x8] sm:$0xff] %vm22_vm1, %v203_v8 }
   0x3   :  { %v29_v4 = vld [vmem:[%s278_s0] sm:$0xff]  ;;  %80 = vperm.xlu2 %187, %v75_v3   ;;  %v76_v7 = vld [vmem:[%s279_s3 + $0x8] sm:$0xff]  ;;  %v71_v10 = vand.u32 127, %v70_v9  ;;  %27 = vst.msk [vmem:[#allocation4] sm:$0xff] %vm22_vm1, %v204_v21 }
   0x4   :  { %v31_v6 = vpack.c.bf16 %v30_v5, %v29_v4  ;;  %v189_v11 = vld [vmem:[%s280_s2] ss:$0 sm:$0xff]  ;;  %25 = vst.msk [vmem:[#allocation3] sm:$0xff] %vm22_vm1, %v204_v21 }
   0x5   :  { %26 = vst.msk [vmem:[#allocation3 + $0x8] sm:$0xff] %vm22_vm1, %v204_v21 }
   0x6   :  { %63 = vmatpush.bf16.msra.mxu0 %v181_v2  ;;  %28 = vst.msk [vmem:[#allocation4 + $0x8] sm:$0xff] %vm22_vm1, %v204_v21 }
   0x8   :  { %v101_v23 = vld [vmem:[#allocation2] sm:$0xff] }
   0x9   :  { %180 = vmatmul.msk.bf16.vlgmr.msra.gmra.mxu0 %vm52_vm0, %v31_v6  ;;  %v102_v30 = vld [vmem:[#allocation2 + $0x8] sm:$0xff] }
   0xa   :  { %v77_v24 = vld [vmem:[#allocation4] sm:$0xff] }
   0xb   :  { %83 = vperm.xlu2 %187, %v76_v7   ;;  %v117_v49 = vld [vmem:[#allocation3] sm:$0xff] }
   0xc   :  { %v118_v54 = vld [vmem:[#allocation3 + $0x8] sm:$0xff] }
   0xd   :  { %v78_v55 = vld [vmem:[#allocation4 + $0x8] sm:$0xff] }
  0x5d   :  { %v81_v12 = vpop.permute.xlu2 %80 }
  0x5e   :  { %vm85_vm2 = vcmp.eq.s32.totalorder %v71_v10, %v81_v12 }
  0x65   :  { %v84_v22 = vpop.permute.xlu2 %83 }
  0x66   :  { %vm86_vm4 = vcmp.eq.s32.totalorder %v71_v10, %v84_v22 }
  0x86   :  { %v65_v13 = vpop.f32.mrf.mxu0 }
  0x87   :  { %v66_v14 = vadd.f32 %v189_v11, %v65_v13 }
  0x89   :  { %v103_v15 = vsel %vm89_vm3, %v66_v14, -inf  ;;  %v87_v16 = vsel %vm85_vm2, %v66_v14, 0.0 }
  0x8a   :  { %104 = vmax.xlane.f32.xlu0 %v103_v15  ;;  %v90_v17 = vsel %vm89_vm3, %v87_v16, 0.0 }
  0x8b   :  { %91 = vadd.xlane.f32.xlu2 %v90_v17 }
  0x8e   :  { %v67_v18 = vpop.f32.mrf.mxu0 }
  0x8f   :  { %v68_v19 = vadd.f32 %v189_v11, %v67_v18 }
  0x91   :  { %v106_v20 = vsel %vm89_vm3, %v68_v19, -inf  ;;  %v88_v42 = vsel %vm86_vm4, %v68_v19, 0.0 }
  0x92   :  { %107 = vmax.xlane.f32.xlu0 %v106_v20  ;;  %v93_v44 = vsel %vm89_vm3, %v88_v42, 0.0 }
  0xfd   :  { %v105_v25 = vpop.xlane.xlu0 %104 }
  0xfe   :  { %v109_v26 = vmax.f32 %v101_v23, %v105_v25  ;;  %v92_v27 = vpop.xlane.xlu2 %91 }
  0xff   :  { %v96_v28 = vadd.f32 %v92_v27, %v77_v24 }
 0x100   :  { %v111_v29 = vsub.f32 %v101_v23, %v109_v26  ;;  %147 = vst.msk [vmem:[#allocation2] sm:$0xff] %vm22_vm1, %v109_v26  ;;  %123 = vperm.xlu1 %186, %v109_v26  }
 0x101   :  { %99 = vst.msk [vmem:[#allocation4] sm:$0xff] %vm22_vm1, %v96_v28 }
 0x102   :  { %v113_v46 = vmul.f32 1.442695, %v111_v29 }
 0x105   :  { %v108_v31 = vpop.xlane.xlu0 %107 }
 0x106   :  { %v110_v32 = vmax.f32 %v102_v30, %v108_v31 }
 0x107   :  { %v152_v1 = vld [vmem:[#allocation2] sm:$0xff] }
 0x108   :  { %v112_v33 = vsub.f32 %v102_v30, %v110_v32  ;;  %148 = vst.msk [vmem:[#allocation2 + $0x8] sm:$0xff] %vm22_vm1, %v110_v32  ;;  %128 = vperm.xlu1 %186, %v110_v32   ;;  %v162_v3 = vld [vmem:[#allocation4] sm:$0xff] }
 0x10a   :  { %v115_v47 = vmul.f32 1.442695, %v112_v33 }
 0x10f   :  { %v153_v7 = vld [vmem:[#allocation2 + $0x8] sm:$0xff] }
 0x172   :  { %v124_v34 = vpop.permute.xlu1 %123 }
 0x173   :  { %v131_v35 = vsub.f32 %v66_v14, %v124_v34 }
 0x175   :  { %v133_v36 = vmul.f32 1.442695, %v131_v35 }
 0x177   :  { %190 = vpow2.f32 %v133_v36 }
 0x17a   :  { %v129_v37 = vpop.permute.xlu1 %128 }
 0x17b   :  { %v132_v38 = vsub.f32 %v68_v19, %v129_v37 }
 0x17d   :  { %v191_v39 = vpop.eup %190  ;;  %v135_v40 = vmul.f32 1.442695, %v132_v38 }
 0x17e   :  { %v137_v41 = vsel %vm89_vm3, %v191_v39, 0.0 }
 0x17f   :  { %192 = vpow2.f32 %v135_v40  ;;  %138 = vadd.xlane.f32.xlu0 %v137_v41 }
 0x180   :  { %194 = vpow2.f32 %v113_v46 }
 0x181   :  { %196 = vpow2.f32 %v115_v47 }
 0x185   :  { %v193_v43 = vpop.eup %192 }
 0x186   :  { %v140_v45 = vsel %vm89_vm3, %v193_v43, 0.0  ;;  %v195_v48 = vpop.eup %194 }
 0x187   :  { %94 = vadd.xlane.f32.xlu0 %v93_v44  ;;  %141 = vadd.xlane.f32.xlu1 %v140_v45  ;;  %v119_v50 = vmul.f32 %v195_v48, %v117_v49  ;;  %v197_v53 = vpop.eup %196 }
 0x188   :  { %v120_v56 = vmul.f32 %v197_v53, %v118_v54 }
 0x1f2   :  { %v139_v51 = vpop.xlane.xlu0 %138 }
 0x1f3   :  { %v143_v52 = vadd.f32 %v139_v51, %v119_v50 }
 0x1f5   :  { %145 = vst.msk [vmem:[#allocation3] sm:$0xff] %vm22_vm1, %v143_v52 }
 0x1fa   :  { %v142_v57 = vpop.xlane.xlu1 %141  ;;  %v95_v58 = vpop.xlane.xlu0 %94 }
 0x1fb   :  { %v144_v59 = vadd.f32 %v142_v57, %v120_v56  ;;  %v97_v60 = vadd.f32 %v95_v58, %v78_v55 }
 0x1fc   :  { %v154_v61 = vld [vmem:[#allocation3] sm:$0xff] }
 0x1fd   :  { %198 = vlog2.f32 %v154_v61  ;;  %146 = vst.msk [vmem:[#allocation3 + $0x8] sm:$0xff] %vm22_vm1, %v144_v59 }
 0x1fe   :  { %100 = vst.msk [vmem:[#allocation4 + $0x8] sm:$0xff] %vm22_vm1, %v97_v60 }
 0x203   :  { %v199_v62 = vpop.eup %198 }
 0x204   :  { %v157_v63 = vmul.f32 0.6931472, %v199_v62  ;;  %v155_v0 = vld [vmem:[#allocation3 + $0x8] sm:$0xff] }
 0x205   :  { %200 = vlog2.f32 %v155_v0  ;;  %v163_v9 = vld [vmem:[#allocation4 + $0x8] sm:$0xff] }
 0x206   :  { %v160_v2 = vadd.f32 %v157_v63, %v152_v1 }
 0x208   :  { %v164_v4 = vsub.f32 %v160_v2, %v162_v3 }
 0x20a   :  { %166 = vst.msk [vmem:[%s281_s4] sm:$0xff] %vm22_vm1, %v164_v4 }
 0x20b   :  { %v201_v5 = vpop.eup %200 }
 0x20c   :  { %v159_v6 = vmul.f32 0.6931472, %v201_v5 }
 0x20e   :  { %v161_v8 = vadd.f32 %v159_v6, %v153_v7 }
 0x210   :  { %v165_v10 = vsub.f32 %v161_v8, %v163_v9 }
 0x212   :  { %167 = vst.msk [vmem:[%s281_s4 + $0x8] sm:$0xff] %vm22_vm1, %v165_v10 }

// kernel: language_model_forward.17
= control target key start
LH: loop header
LB: loop body
LE: loop exit
PB: predicated region body
PF: predicated region fallthrough
CT: control target
= control target key end

     0   :  { %vm28_vm0 = vcmask 261120   ;;  %v207_v1 = vmov 0.0   ;;  %vm68_vm1 = vcmask 523264   ;;  %v208_v25 = vmov 32.0   ;;  %s293_s1 = inlined_call_operand.vmem [shape: bf16[64,32], index: 1, kind: input, shape index: {}]   ;;  %s294_s0 = inlined_call_operand.vmem [shape: f32[16,64], index: 0, kind: input, shape index: {}]   ;;  %s295_s2 = inlined_call_operand.vmem [shape: f32[1,32], index: 2, kind: input, shape index: {}]   ;;  %s296_s3 = inlined_call_operand.vmem [shape: f32[16,32], index: 3, kind: input, shape index: {}]   ;;  %s297_s4 = inlined_call_operand.vmem [shape: f32[1,32], index: 4, kind: input, shape index: {}]   ;;  %s298_s5 = inlined_call_operand.vmem [shape: f32[1,32], index: 5, kind: input, shape index: {}]   ;;  %s299_s6 = inlined_call_operand.vmem [shape: f32[16,32], index: 6, kind: output, shape index: {}]  }
   0x1   :  { %v195_v0 = vld [vmem:[%s293_s1 + $0x18] sm:$0xff]  ;;  %29 = vst.msk [vmem:[#allocation2] sm:$0xff] %vm28_vm0, %v207_v1  ;;  %v194_v2 = vld [vmem:[%s293_s1 + $0x10] sm:$0xff]  ;;  %v193_v3 = vld [vmem:[%s293_s1 + $0x8] sm:$0xff]  ;;  %201 = vrcp.f32 %v208_v25 }
   0x2   :  { %30 = vst.msk [vmem:[#allocation2 + $0x8] sm:$0xff] %vm28_vm0, %v207_v1  ;;  %76 = vmatpush.bf16.msra.mxu0 %v195_v0  ;;  %v192_v4 = vld [vmem:[%s293_s1] sm:$0xff]  ;;  %v34_v6 = vld [vmem:[%s294_s0 + $0x8] sm:$0xff] }
   0x3   :  { %v33_v5 = vld [vmem:[%s294_s0] sm:$0xff]  ;;  %v103_v21 = vld [vmem:[%s296_s3 + $0x8] sm:$0xff] }
   0x4   :  { %v35_v7 = vpack.c.bf16 %v34_v6, %v33_v5  ;;  %v198_v12 = vld [vmem:[%s295_s2] ss:$0 sm:$0xff] }
   0x5   :  { %v102_v16 = vld [vmem:[%s296_s3] sm:$0xff] }
   0x6   :  { %77 = vmatpush.bf16.msra.mxu0 %v194_v2  ;;  %v199_v56 = vld [vmem:[%s297_s4] ss:$0 sm:$0xff] }
   0x7   :  { %v202_v26 = vpop.eup %201  ;;  %v200_v59 = vld [vmem:[%s298_s5] ss:$0 sm:$0xff] }
   0x8   :  { %v31_v8 = vld [vmem:[#allocation2] sm:$0xff]  ;;  %v113_v27 = vmul.f32 32.0, %v202_v26  ;;  %vm117_vm2 = vweird.f32 %v202_v26 }
   0x9   :  { %v32_v11 = vld [vmem:[#allocation2 + $0x8] sm:$0xff] }
   0xa   :  { %78 = vmatpush.bf16.msra.mxu0 %v193_v3  ;;  %v114_v28 = vsub.f32 1.0, %v113_v27 }
   0xc   :  { %v115_v29 = vmul.f32 %v202_v26, %v114_v28 }
   0xe   :  { %79 = vmatpush.bf16.msra.mxu0 %v192_v4  ;;  %v116_v30 = vadd.f32 %v202_v26, %v115_v29 }
  0x10   :  { %v118_v31 = vsel %vm117_vm2, %v202_v26, %v116_v30 }
  0x11   :  { %191 = vmatmul.msk.bf16.vlgmr.msra.gmra.mxu0 %vm68_vm1, %v35_v7 }
  0x8e   :  { %v81_v9 = vpop.f32.mrf.mxu0 }
  0x8f   :  { %v86_v10 = vadd.f32 %v81_v9, %v31_v8 }
  0x91   :  { %89 = vst.msk [vmem:[#allocation2] sm:$0xff] %vm28_vm0, %v86_v10 }
  0x96   :  { %v83_v13 = vpop.f32.mrf.mxu0 }
  0x97   :  { %v87_v14 = vadd.f32 %v83_v13, %v32_v11 }
  0x98   :  { %v94_v15 = vld [vmem:[#allocation2] sm:$0xff] }
  0x99   :  { %90 = vst.msk [vmem:[#allocation2 + $0x8] sm:$0xff] %vm28_vm0, %v87_v14  ;;  %v100_v17 = vadd.f32 %v198_v12, %v94_v15 }
  0x9b   :  { %v104_v18 = vadd.f32 %v102_v16, %v100_v17 }
  0x9d   :  { %v106_v19 = vsel %vm28_vm0, %v104_v18, 0.0 }
  0x9e   :  { %107 = vadd.xlane.f32.xlu0 %v106_v19 }
  0xa0   :  { %v95_v20 = vld [vmem:[#allocation2 + $0x8] sm:$0xff] }
  0xa1   :  { %v101_v22 = vadd.f32 %v198_v12, %v95_v20 }
  0xa3   :  { %v105_v23 = vadd.f32 %v103_v21, %v101_v22 }
  0xa5   :  { %v109_v24 = vsel %vm28_vm0, %v105_v23, 0.0 }
  0xa6   :  { %110 = vadd.xlane.f32.xlu0 %v109_v24 }
 0x111   :  { %v108_v32 = vpop.xlane.xlu0 %107 }
 0x112   :  { %v119_v33 = vmul.f32 %v118_v31, %v108_v32 }
 0x114   :  { %v121_v34 = vsub.f32 %v104_v18, %v119_v33 }
 0x116   :  { %v123_v35 = vmul.f32 %v121_v34, %v121_v34 }
 0x118   :  { %v125_v36 = vsel %vm28_vm0, %v123_v35, 0.0 }
 0x119   :  { %126 = vadd.xlane.f32.xlu1 %v125_v36  ;;  %v111_v37 = vpop.xlane.xlu0 %110 }
 0x11a   :  { %v120_v38 = vmul.f32 %v118_v31, %v111_v37 }
 0x11c   :  { %v122_v39 = vsub.f32 %v105_v23, %v120_v38 }
 0x11e   :  { %v124_v40 = vmul.f32 %v122_v39, %v122_v39 }
 0x120   :  { %v128_v41 = vsel %vm28_vm0, %v124_v40, 0.0 }
 0x121   :  { %129 = vadd.xlane.f32.xlu1 %v128_v41 }
 0x18c   :  { %v127_v42 = vpop.xlane.xlu1 %126 }
 0x18d   :  { %v131_v43 = vmul.f32 %v127_v42, %v118_v31 }
 0x18f   :  { %v133_v44 = vadd.f32 1e-12, %v131_v43 }
 0x191   :  { %203 = vrsqrt.f32 %v133_v44  ;;  %vm141_vm4 = vweird.f32 %v133_v44 }
 0x194   :  { %v130_v45 = vpop.xlane.xlu1 %129 }
 0x195   :  { %v132_v46 = vmul.f32 %v130_v45, %v118_v31 }
 0x197   :  { %v204_v47 = vpop.eup %203  ;;  %v134_v48 = vadd.f32 1e-12, %v132_v46 }
 0x198   :  { %v136_v49 = vmul.f32 %v204_v47, %v133_v44  ;;  %vm142_vm3 = vweird.f32 %v204_v47 }
 0x199   :  { %205 = vrsqrt.f32 %v134_v48  ;;  %vm143_vm5 = vmor %vm141_vm4, %vm142_vm3  ;;  %vm151_vm7 = vweird.f32 %v134_v48 }
 0x19a   :  { %v137_v50 = vmul.f32 %v204_v47, %v136_v49 }
 0x19c   :  { %v138_v51 = vmul.f32 0.5, %v137_v50 }
 0x19e   :  { %v139_v52 = vsub.f32 1.5, %v138_v51 }
 0x19f   :  { %v206_v53 = vpop.eup %205 }
 0x1a0   :  { %v140_v54 = vmul.f32 %v204_v47, %v139_v52  ;;  %v146_v55 = vmul.f32 %v206_v53, %v134_v48  ;;  %vm152_vm6 = vweird.f32 %v206_v53 }
 0x1a1   :  { %vm153_vm8 = vmor %vm151_vm7, %vm152_vm6 }
 0x1a2   :  { %v144_v57 = vsel %vm143_vm5, %v204_v47, %v140_v54  ;;  %v147_v58 = vmul.f32 %v206_v53, %v146_v55 }
 0x1a3   :  { %v155_v60 = vmul.f32 %v144_v57, %v121_v34 }
 0x1a4   :  { %v148_v61 = vmul.f32 0.5, %v147_v58 }
 0x1a5   :  { %v161_v62 = vmul.f32 %v199_v56, %v155_v60 }
 0x1a6   :  { %v149_v63 = vsub.f32 1.5, %v148_v61 }
 0x1a7   :  { %v167_v0 = vadd.f32 %v200_v59, %v161_v62 }
 0x1a8   :  { %v150_v1 = vmul.f32 %v206_v53, %v149_v63 }
 0x1a9   :  { %169 = vst.msk [vmem:[%s299_s6] sm:$0xff] %vm28_vm0, %v167_v0 }
 0x1aa   :  { %v154_v2 = vsel %vm153_vm8, %v206_v53, %v150_v1 }
 0x1ab   :  { %v156_v3 = vmul.f32 %v154_v2, %v122_v39 }
 0x1ad   :  { %v162_v4 = vmul.f32 %v199_v56, %v156_v3 }
 0x1af   :  { %v168_v5 = vadd.f32 %v200_v59, %v162_v4 }
 0x1b1   :  { %170 = vst.msk [vmem:[%s299_s6 + $0x8] sm:$0xff] %vm28_vm0, %v168_v5 }

</bundles_post_ra>
